<compile_context>
chip_gen: v6e
topology: v6e:2x2x1
jax: 0.10.0
libtpu: 0.0.40
codegen_flags: <defaults>
</compile_context>

<pallas_src>
import functools

import jax
import jax.numpy as jnp
from jax import lax
from jax.experimental import pallas as pl
from jax.experimental.pallas import tpu as pltpu


def _round_up(x, m):
    return ((x + m - 1) // m) * m


def _tpu_vmem_bytes():
    try:
        return int(pltpu.get_tpu_info().vmem_capacity_bytes)
    except Exception:
        return 64 << 20  # conservative default (v7x per-TC VMEM)


# ---------------------------------------------------------------------------
# kernel
# ---------------------------------------------------------------------------
def contrastive_kernel(x_ref, wb_ref, bb_ref, w1_ref, b1_ref, w2_ref, b2_ref,
                       o_ref, acc_ref):
    k = pl.program_id(1)

    @pl.when(k == 0)
    def _init():
        acc_ref[...] = jnp.zeros_like(acc_ref)

    # backbone partial matmul: [tb, tk] @ [tk, Dbb], accumulated in f32
    acc_ref[...] += jnp.dot(x_ref[...], wb_ref[...],
                            preferred_element_type=jnp.float32)

    @pl.when(k == pl.num_programs(1) - 1)
    def _epilogue():
        feat = acc_ref[...] + bb_ref[...]                        # f32
        # head (mlp): Linear -> ReLU -> Linear, bf16 operands / f32 accumulation
        h = jnp.dot(feat.astype(jnp.bfloat16), w1_ref[...],
                    preferred_element_type=jnp.float32) + b1_ref[...]
        h = jnp.maximum(h, 0.0)
        out = jnp.dot(h.astype(jnp.bfloat16), w2_ref[...],
                      preferred_element_type=jnp.float32) + b2_ref[...]
        # F.normalize(out, dim=1, eps=1e-12)  ==  out * rsqrt(max(sumsq, eps^2))
        sumsq = jnp.sum(out * out, axis=1, keepdims=True)
        inv_norm = lax.rsqrt(jnp.maximum(sumsq, 1e-24))
        o_ref[...] = (out * inv_norm).astype(o_ref.dtype)


# ---------------------------------------------------------------------------
# pallas_call builder (cached on static config)
# ---------------------------------------------------------------------------
@functools.lru_cache(maxsize=64)
def _build_call(tb, tk, b_p, din_p, dbb_p, f_p, vmem_limit, single_buffer_residents):
    res_kw = {}
    if single_buffer_residents and hasattr(pl, "Buffered"):
        # constant-index residents: one buffer instead of the default two
        res_kw = dict(pipeline_mode=pl.Buffered(1))

    grid = (b_p // tb, din_p // tk)
    return pl.pallas_call(
        contrastive_kernel,
        out_shape=jax.ShapeDtypeStruct((b_p, f_p), jnp.float32),
        grid=grid,
        in_specs=[
            pl.BlockSpec((tb, tk), lambda i, k: (i, k)),                  # x tile (streamed)
            pl.BlockSpec((tk, dbb_p), lambda i, k: (k, 0)),               # wb K-slice (streamed)
            pl.BlockSpec((1, dbb_p), lambda i, k: (0, 0), **res_kw),      # bb (resident)
            pl.BlockSpec((dbb_p, dbb_p), lambda i, k: (0, 0), **res_kw),  # w1 (resident)
            pl.BlockSpec((1, dbb_p), lambda i, k: (0, 0), **res_kw),      # b1 (resident)
            pl.BlockSpec((dbb_p, f_p), lambda i, k: (0, 0), **res_kw),    # w2 (resident)
            pl.BlockSpec((1, f_p), lambda i, k: (0, 0), **res_kw),        # b2 (resident)
        ],
        out_specs=pl.BlockSpec((tb, f_p), lambda i, k: (i, 0)),
        scratch_shapes=[pltpu.VMEM((tb, dbb_p), jnp.float32)],
        compiler_params=pltpu.CompilerParams(
            dimension_semantics=("parallel", "arbitrary"),
            vmem_limit_bytes=int(vmem_limit)),
    )


# ---------------------------------------------------------------------------
# one-time parameter preparation (hoisted out of the per-call hot path)
# ---------------------------------------------------------------------------
def prepare_params(params, in_dim):
    """Pad to 128-lane-dense widths and cast matmul weights to bf16, once."""
    wb, bb = params["wb"], params["bb"]
    w1, b1 = params["w1"], params["b1"]
    w2, b2 = params["w2"], params["b2"]
    dbb, fdim = wb.shape[1], w2.shape[1]

    din_p = _round_up(in_dim, 128)
    dbb_p = _round_up(dbb, 128)
    f_p = _round_up(fdim, 128)

    def pad2(a, rows, cols, dtype):
        return jnp.pad(
            a, ((0, rows - a.shape[0]), (0, cols - a.shape[1]))).astype(dtype)

    # Zero padding keeps the math exact: padded x cols / wb rows contribute 0 to the
    # accumulation, padded hidden columns stay 0 through bias-add(0) + ReLU, and padded
    # output columns stay 0 so the L2 norm over axis 1 is unchanged.
    return dict(
        din=int(in_dim), din_p=int(din_p), dbb=int(dbb), dbb_p=int(dbb_p),
        fdim=int(fdim), f_p=int(f_p),
        wb=pad2(wb, din_p, dbb_p, jnp.bfloat16),
        w1=pad2(w1, dbb_p, dbb_p, jnp.bfloat16),
        w2=pad2(w2, dbb_p, f_p, jnp.bfloat16),
        bb=pad2(bb, 1, dbb_p, jnp.float32),
        b1=pad2(b1, 1, dbb_p, jnp.float32),
        b2=pad2(b2, 1, f_p, jnp.float32),
    )


# ---------------------------------------------------------------------------
# forward
# ---------------------------------------------------------------------------
_BUFFERED_STATE = {"ok": None}   # remembers whether pl.Buffered(1) lowered cleanly


def contrastive_forward(x_nchw, prep, *, tb=256, tk_max=1024):
    """Forward pass using pre-padded params from prepare_params()."""
    B = x_nchw.shape[0]
    din, din_p = prep["din"], prep["din_p"]
    dbb_p, f_p, fdim = prep["dbb_p"], prep["f_p"], prep["fdim"]

    phys_vmem = _tpu_vmem_bytes()
    # per-generation scoped-VMEM cap: ~100 MiB on 128-MiB parts (v5e/v6e),
    # <=48 MiB on 64-MiB v7x
    if phys_vmem >= (100 << 20):
        cap = 100 << 20
    else:
        cap = min(48 << 20, max(16 << 20, phys_vmem - (16 << 20)))

    # batch tile: >=8 rows (one f32 sublane); default 256 for MXU M-fill / intensity
    tb = max(8, min(tb, _round_up(B, 8)))
    # v7x-sized VMEM => 2 TensorCores: keep >=2 batch tiles when the batch allows
    if phys_vmem <= (96 << 20) and _round_up(B, 8) >= 16:
        tb = min(tb, _round_up(-(-B // 2), 8))
    b_p = _round_up(B, tb)

    # K tile: largest multiple of 128 <= tk_max that divides din_p (no dead padding)
    tk = 128
    t = 128
    while t <= min(tk_max, din_p):
        if din_p % t == 0:
            tk = t
        t += 128

    def vmem_need(tb_, tk_, single_res):
        streamed = 2 * (tb_ * tk_ * 2 + tk_ * dbb_p * 2) + 2 * (tb_ * f_p * 4)
        rmult = 1 if single_res else 2
        resident = rmult * ((dbb_p * dbb_p + dbb_p * f_p) * 2 + (2 * dbb_p + f_p) * 4)
        scratch = tb_ * dbb_p * 4
        return streamed + resident + scratch

    # shrink tiles until even the worst-case (double-buffered-resident) budget fits
    while vmem_need(tb, tk, False) > cap and tb > 8:
        tb = max(8, tb // 2)
        b_p = _round_up(B, tb)
    while vmem_need(tb, tk, False) > cap and tk > 128:
        nt = tk - 128
        while nt > 128 and din_p % nt != 0:
            nt -= 128
        tk = nt

    # glue: NCHW -> [B, C*H*W]; cast to bf16 *before* padding, skip pad when aligned
    x_flat = x_nchw.reshape(B, -1).astype(jnp.bfloat16)
    if (B, din) != (b_p, din_p):
        x_flat = jnp.pad(x_flat, ((0, b_p - B), (0, din_p - din)))

    args = (x_flat, prep["wb"], prep["bb"], prep["w1"], prep["b1"],
            prep["w2"], prep["b2"])

    modes = []
    if hasattr(pl, "Buffered") and _BUFFERED_STATE["ok"] is not False:
        modes.append(True)
    modes.append(False)

    for single_res in modes:
        vmem_limit = min(cap, max(8 << 20, int(1.5 * vmem_need(tb, tk, single_res))))
        try:
            fn = _build_call(tb, tk, b_p, din_p, dbb_p, f_p,
                             int(vmem_limit), bool(single_res))
            out_p = jax.block_until_ready(fn(*args))
            if single_res:
                _BUFFERED_STATE["ok"] = True
            return out_p[:B, :fdim]
        except Exception:
            if single_res and len(modes) > 1:
                # this JAX build rejects Buffered(1) residents -> default buffering
                _BUFFERED_STATE["ok"] = False
                continue
            raise


def contrastive_model(x_nchw, params, *, tb=256, tk_max=1024):
    """Convenience wrapper: prepares params and runs the forward (use
    prepare_params() once + contrastive_forward() for repeated calls)."""
    in_dim = 1
    for d in x_nchw.shape[1:]:
        in_dim *= d
    prep = prepare_params(params, in_dim)
    return contrastive_forward(x_nchw, prep, tb=tb, tk_max=tk_max)


# ---------------------------------------------------------------------------
# parameters / references
# ---------------------------------------------------------------------------
def init_params(key, in_dim, backbone_dim, features_dim):
    """Deterministic synthetic parameters (weights are [in, out])."""
    ks = jax.random.split(key, 6)
    scale = lambda fan_in: 1.0 / jnp.sqrt(jnp.float32(fan_in))
    return dict(
        wb=jax.random.normal(ks[0], (in_dim, backbone_dim), jnp.float32) * scale(in_dim),
        bb=jax.random.normal(ks[1], (1, backbone_dim), jnp.float32) * 0.01,
        w1=jax.random.normal(ks[2], (backbone_dim, backbone_dim), jnp.float32) * scale(backbone_dim),
        b1=jax.random.normal(ks[3], (1, backbone_dim), jnp.float32) * 0.01,
        w2=jax.random.normal(ks[4], (backbone_dim, features_dim), jnp.float32) * scale(backbone_dim),
        b2=jax.random.normal(ks[5], (1, features_dim), jnp.float32) * 0.01,
    )


def reference_forward_f32(x_nchw, params):
    """Pure-f32 JAX reference (the original PyTorch semantics)."""
    B = x_nchw.shape[0]
    x = x_nchw.reshape(B, -1).astype(jnp.float32)
    feat = x @ params["wb"] + params["bb"]
    h = jnp.maximum(feat @ params["w1"] + params["b1"], 0.0)
    out = h @ params["w2"] + params["b2"]
    norm = jnp.sqrt(jnp.sum(out * out, axis=1, keepdims=True))
    return out / jnp.maximum(norm, 1e-12)


def reference_forward_bf16(x_nchw, params):
    """Reference with the same bf16-operand / f32-accumulate numerics as the kernel."""
    B = x_nchw.shape[0]
    x = x_nchw.reshape(B, -1).astype(jnp.bfloat16)
    feat = jnp.dot(x, params["wb"].astype(jnp.bfloat16),
                   preferred_element_type=jnp.float32) + params["bb"]
    h = jnp.dot(feat.astype(jnp.bfloat16), params["w1"].astype(jnp.bfloat16),
                preferred_element_type=jnp.float32) + params["b1"]
    h = jnp.maximum(h, 0.0)
    out = jnp.dot(h.astype(jnp.bfloat16), params["w2"].astype(jnp.bfloat16),
                  preferred_element_type=jnp.float32) + params["b2"]
    norm = jnp.sqrt(jnp.sum(out * out, axis=1, keepdims=True))
    return out / jnp.maximum(norm, 1e-12)


if __name__ == "__main__":
    # small shapes consistent with the module:
    #   x: [B=2, C=4, H=16, W=16]  -> backbone_dim=32 -> features_dim=128
    B, C, H, W = 2, 4, 16, 16
    backbone_dim, features_dim = 32, 128
    in_dim = C * H * W

    key = jax.random.PRNGKey(0)
    kx, kp = jax.random.split(key)
    x = jax.random.normal(kx, (B, C, H, W), jnp.float32)
    params = init_params(kp, in_dim, backbone_dim, features_dim)

    prep = prepare_params(params, in_dim)       # pad/cast once, outside the hot path
    out = contrastive_forward(x, prep)
    out = jax.block_until_ready(out)
    assert out.shape == (B, features_dim)

    # tight check vs a reference that uses the same bf16-operand numerics
    ref_bf16 = reference_forward_bf16(x, params)
    assert jnp.allclose(out, ref_bf16, atol=2e-4, rtol=2e-4), \
        "mismatch vs bf16-matched reference"

    # loose sanity check vs the pure-f32 PyTorch-equivalent reference
    ref_f32 = reference_forward_f32(x, params)
    assert jnp.max(jnp.abs(out - ref_f32)) < 2e-2, "drifted too far from f32 reference"

    # L2-normalized rows should have unit norm
    assert jnp.allclose(jnp.linalg.norm(out, axis=1), 1.0, atol=1e-3)

    print("KERNEL_OK")
</pallas_src>

<mosaic_0001>
module attributes {stable_mosaic.version = 11 : i64} {
  func.func @contrastive_kernel(%arg0: i32, %arg1: i32, %arg2: memref<8x1024xbf16, #tpu.memory_space<vmem>>, %arg3: memref<1024x128xbf16, #tpu.memory_space<vmem>>, %arg4: memref<1x128xf32, #tpu.memory_space<vmem>>, %arg5: memref<128x128xbf16, #tpu.memory_space<vmem>>, %arg6: memref<1x128xf32, #tpu.memory_space<vmem>>, %arg7: memref<128x128xbf16, #tpu.memory_space<vmem>>, %arg8: memref<1x128xf32, #tpu.memory_space<vmem>>, %arg9: memref<8x128xf32, #tpu.memory_space<vmem>>, %arg10: memref<8x128xf32, #tpu.memory_space<vmem>>) attributes {dimension_semantics = [#tpu.dimension_semantics<parallel>, #tpu.dimension_semantics<arbitrary>], iteration_bounds = array<i64: 1, 1>, scalar_prefetch = 0 : i64, scratch_operands = 1 : i64, tpu.core_type = #tpu.core_type<tc>, window_params = [{transform_indices = @transform_0, window_bounds = array<i64: 8, 1024>}, {transform_indices = @transform_1, window_bounds = array<i64: 1024, 128>}, {pipeline_mode = #tpu.pipeline_mode<synchronous>, transform_indices = @transform_2, window_bounds = array<i64: 1, 128>}, {pipeline_mode = #tpu.pipeline_mode<synchronous>, transform_indices = @transform_3, window_bounds = array<i64: 128, 128>}, {pipeline_mode = #tpu.pipeline_mode<synchronous>, transform_indices = @transform_4, window_bounds = array<i64: 1, 128>}, {pipeline_mode = #tpu.pipeline_mode<synchronous>, transform_indices = @transform_5, window_bounds = array<i64: 128, 128>}, {pipeline_mode = #tpu.pipeline_mode<synchronous>, transform_indices = @transform_6, window_bounds = array<i64: 1, 128>}, {transform_indices = @transform_7, window_bounds = array<i64: 8, 128>}]} {
    %c0_i32 = arith.constant 0 : i32
    %0 = arith.cmpi eq, %arg1, %c0_i32 : i32
    %1 = arith.extui %0 : i1 to i32
    %c0_i32_0 = arith.constant 0 : i32
    %2 = arith.cmpi ne, %1, %c0_i32_0 : i32
    scf.if %2 {
      %cst_10 = arith.constant 0.000000e+00 : f32
      %12 = vector.broadcast %cst_10 : f32 to vector<8x128xf32>
      %c0_11 = arith.constant 0 : index
      %c0_12 = arith.constant 0 : index
      %13 = vector.load %arg10[%c0_11, %c0_12] : memref<8x128xf32, #tpu.memory_space<vmem>>, vector<8x128xf32>
      tpu.vector_store %arg10[%c0_11, %c0_12], %12 {strides = array<i32>} : memref<8x128xf32, #tpu.memory_space<vmem>>, vector<8x128xf32>,
    } else {
    }
    %c0 = arith.constant 0 : index
    %c0_1 = arith.constant 0 : index
    %3 = vector.load %arg10[%c0, %c0_1] : memref<8x128xf32, #tpu.memory_space<vmem>>, vector<8x128xf32>
    %c0_2 = arith.constant 0 : index
    %c0_3 = arith.constant 0 : index
    %4 = vector.load %arg2[%c0_2, %c0_3] : memref<8x1024xbf16, #tpu.memory_space<vmem>>, vector<8x1024xbf16>
    %c0_4 = arith.constant 0 : index
    %c0_5 = arith.constant 0 : index
    %5 = vector.load %arg3[%c0_4, %c0_5] : memref<1024x128xbf16, #tpu.memory_space<vmem>>, vector<1024x128xbf16>
    %cst = arith.constant dense<0.000000e+00> : vector<8x128xf32>
    %6 = tpu.matmul %4, %5, %cst {dimension_numbers = #tpu.dot_dimension_numbers<[1], [0], [0], [1], [0, 0, 1, 1], [], []>} : vector<8x1024xbf16>, vector<1024x128xbf16>, vector<8x128xf32> -> vector<8x128xf32>
    %7 = arith.addf %3, %6 : vector<8x128xf32>
    %c0_6 = arith.constant 0 : index
    %c0_7 = arith.constant 0 : index
    %8 = vector.load %arg10[%c0_6, %c0_7] : memref<8x128xf32, #tpu.memory_space<vmem>>, vector<8x128xf32>
    tpu.vector_store %arg10[%c0_6, %c0_7], %7 {strides = array<i32>} : memref<8x128xf32, #tpu.memory_space<vmem>>, vector<8x128xf32>,
    %c0_i32_8 = arith.constant 0 : i32
    %9 = arith.cmpi eq, %arg1, %c0_i32_8 : i32
    %10 = arith.extui %9 : i1 to i32
    %c0_i32_9 = arith.constant 0 : i32
    %11 = arith.cmpi ne, %10, %c0_i32_9 : i32
    scf.if %11 {
      %c0_10 = arith.constant 0 : index
      %c0_11 = arith.constant 0 : index
      %12 = vector.load %arg10[%c0_10, %c0_11] : memref<8x128xf32, #tpu.memory_space<vmem>>, vector<8x128xf32>
      %c0_12 = arith.constant 0 : index
      %c0_13 = arith.constant 0 : index
      %13 = vector.load %arg4[%c0_12, %c0_13] : memref<1x128xf32, #tpu.memory_space<vmem>>, vector<1x128xf32>
      %14 = vector.broadcast %13 : vector<1x128xf32> to vector<8x128xf32>
      %15 = arith.addf %12, %14 : vector<8x128xf32>
      %16 = arith.truncf %15 : vector<8x128xf32> to vector<8x128xbf16>
      %c0_14 = arith.constant 0 : index
      %c0_15 = arith.constant 0 : index
      %17 = vector.load %arg5[%c0_14, %c0_15] : memref<128x128xbf16, #tpu.memory_space<vmem>>, vector<128x128xbf16>
      %cst_16 = arith.constant dense<0.000000e+00> : vector<8x128xf32>
      %18 = tpu.matmul %16, %17, %cst_16 {dimension_numbers = #tpu.dot_dimension_numbers<[1], [0], [0], [1], [0, 0, 1, 1], [], []>} : vector<8x128xbf16>, vector<128x128xbf16>, vector<8x128xf32> -> vector<8x128xf32>
      %c0_17 = arith.constant 0 : index
      %c0_18 = arith.constant 0 : index
      %19 = vector.load %arg6[%c0_17, %c0_18] : memref<1x128xf32, #tpu.memory_space<vmem>>, vector<1x128xf32>
      %20 = vector.broadcast %19 : vector<1x128xf32> to vector<8x128xf32>
      %21 = arith.addf %18, %20 : vector<8x128xf32>
      %cst_19 = arith.constant 0.000000e+00 : f32
      %22 = vector.broadcast %cst_19 : f32 to vector<8x128xf32>
      %23 = arith.maximumf %21, %22 : vector<8x128xf32>
      %24 = arith.truncf %23 : vector<8x128xf32> to vector<8x128xbf16>
      %c0_20 = arith.constant 0 : index
      %c0_21 = arith.constant 0 : index
      %25 = vector.load %arg7[%c0_20, %c0_21] : memref<128x128xbf16, #tpu.memory_space<vmem>>, vector<128x128xbf16>
      %cst_22 = arith.constant dense<0.000000e+00> : vector<8x128xf32>
      %26 = tpu.matmul %24, %25, %cst_22 {dimension_numbers = #tpu.dot_dimension_numbers<[1], [0], [0], [1], [0, 0, 1, 1], [], []>} : vector<8x128xbf16>, vector<128x128xbf16>, vector<8x128xf32> -> vector<8x128xf32>
      %c0_23 = arith.constant 0 : index
      %c0_24 = arith.constant 0 : index
      %27 = vector.load %arg8[%c0_23, %c0_24] : memref<1x128xf32, #tpu.memory_space<vmem>>, vector<1x128xf32>
      %28 = vector.broadcast %27 : vector<1x128xf32> to vector<8x128xf32>
      %29 = arith.addf %26, %28 : vector<8x128xf32>
      %30 = arith.mulf %29, %29 : vector<8x128xf32>
      %cst_25 = arith.constant dense<0.000000e+00> : vector<8xf32>
      %31 = vector.multi_reduction <add>, %30, %cst_25 [1] : vector<8x128xf32> to vector<8xf32>
      %32 = vector.shape_cast %31 : vector<8xf32> to vector<8x1xf32>
      %cst_26 = arith.constant 1.000000e-24 : f32
      %33 = vector.broadcast %cst_26 : f32 to vector<8x1xf32>
      %34 = arith.maximumf %32, %33 : vector<8x1xf32>
      %35 = math.rsqrt %34 : vector<8x1xf32>
      %36 = vector.broadcast %35 : vector<8x1xf32> to vector<8x128xf32>
      %37 = arith.mulf %29, %36 : vector<8x128xf32>
      %c0_27 = arith.constant 0 : index
      %c0_28 = arith.constant 0 : index
      %38 = vector.load %arg9[%c0_27, %c0_28] : memref<8x128xf32, #tpu.memory_space<vmem>>, vector<8x128xf32>
      tpu.vector_store %arg9[%c0_27, %c0_28], %37 {strides = array<i32>} : memref<8x128xf32, #tpu.memory_space<vmem>>, vector<8x128xf32>,
    } else {
    }
    return
  }
  func.func @transform_0(%arg0: i32, %arg1: i32) -> (i32, i32) {
    %c0_i32 = arith.constant 0 : i32
    return %arg0, %arg1 : i32, i32
  }
  func.func @transform_1(%arg0: i32, %arg1: i32) -> (i32, i32) {
    %c0_i32 = arith.constant 0 : i32
    %c0_i32_0 = arith.constant 0 : i32
    return %arg1, %c0_i32 : i32, i32
  }
  func.func @transform_2(%arg0: i32, %arg1: i32) -> (i32, i32) {
    %c0_i32 = arith.constant 0 : i32
    %c0_i32_0 = arith.constant 0 : i32
    %c0_i32_1 = arith.constant 0 : i32
    return %c0_i32, %c0_i32_0 : i32, i32
  }
  func.func @transform_3(%arg0: i32, %arg1: i32) -> (i32, i32) {
    %c0_i32 = arith.constant 0 : i32
    %c0_i32_0 = arith.constant 0 : i32
    %c0_i32_1 = arith.constant 0 : i32
    return %c0_i32, %c0_i32_0 : i32, i32
  }
  func.func @transform_4(%arg0: i32, %arg1: i32) -> (i32, i32) {
    %c0_i32 = arith.constant 0 : i32
    %c0_i32_0 = arith.constant 0 : i32
    %c0_i32_1 = arith.constant 0 : i32
    return %c0_i32, %c0_i32_0 : i32, i32
  }
  func.func @transform_5(%arg0: i32, %arg1: i32) -> (i32, i32) {
    %c0_i32 = arith.constant 0 : i32
    %c0_i32_0 = arith.constant 0 : i32
    %c0_i32_1 = arith.constant 0 : i32
    return %c0_i32, %c0_i32_0 : i32, i32
  }
  func.func @transform_6(%arg0: i32, %arg1: i32) -> (i32, i32) {
    %c0_i32 = arith.constant 0 : i32
    %c0_i32_0 = arith.constant 0 : i32
    %c0_i32_1 = arith.constant 0 : i32
    return %c0_i32, %c0_i32_0 : i32, i32
  }
  func.func @transform_7(%arg0: i32, %arg1: i32) -> (i32, i32) {
    %c0_i32 = arith.constant 0 : i32
    %c0_i32_0 = arith.constant 0 : i32
    return %arg0, %c0_i32 : i32, i32
  }
}

module attributes {stable_mosaic.version = 11 : i64} {
  func.func @contrastive_kernel(%arg0: i32, %arg1: i32, %arg2: memref<8x1024xbf16, #tpu.memory_space<vmem>>, %arg3: memref<1024x128xbf16, #tpu.memory_space<vmem>>, %arg4: memref<1x128xf32, #tpu.memory_space<vmem>>, %arg5: memref<128x128xbf16, #tpu.memory_space<vmem>>, %arg6: memref<1x128xf32, #tpu.memory_space<vmem>>, %arg7: memref<128x128xbf16, #tpu.memory_space<vmem>>, %arg8: memref<1x128xf32, #tpu.memory_space<vmem>>, %arg9: memref<8x128xf32, #tpu.memory_space<vmem>>, %arg10: memref<8x128xf32, #tpu.memory_space<vmem>>) attributes {dimension_semantics = [#tpu.dimension_semantics<parallel>, #tpu.dimension_semantics<arbitrary>], iteration_bounds = array<i64: 1, 1>, scalar_prefetch = 0 : i64, scratch_operands = 1 : i64, tpu.core_type = #tpu.core_type<tc>, window_params = [{transform_indices = @transform_0, window_bounds = array<i64: 8, 1024>}, {transform_indices = @transform_1, window_bounds = array<i64: 1024, 128>}, {pipeline_mode = #tpu.pipeline_mode<synchronous>, transform_indices = @transform_2, window_bounds = array<i64: 1, 128>}, {pipeline_mode = #tpu.pipeline_mode<synchronous>, transform_indices = @transform_3, window_bounds = array<i64: 128, 128>}, {pipeline_mode = #tpu.pipeline_mode<synchronous>, transform_indices = @transform_4, window_bounds = array<i64: 1, 128>}, {pipeline_mode = #tpu.pipeline_mode<synchronous>, transform_indices = @transform_5, window_bounds = array<i64: 128, 128>}, {pipeline_mode = #tpu.pipeline_mode<synchronous>, transform_indices = @transform_6, window_bounds = array<i64: 1, 128>}, {transform_indices = @transform_7, window_bounds = array<i64: 8, 128>}]} {
    %c0_i32 = arith.constant 0 : i32
    %0 = arith.cmpi eq, %arg1, %c0_i32 : i32
    %1 = arith.extui %0 : i1 to i32
    %c0_i32_0 = arith.constant 0 : i32
    %2 = arith.cmpi ne, %1, %c0_i32_0 : i32
    scf.if %2 {
      %cst_10 = arith.constant 0.000000e+00 : f32
      %12 = vector.broadcast %cst_10 : f32 to vector<8x128xf32>
      %c0_11 = arith.constant 0 : index
      %c0_12 = arith.constant 0 : index
      %13 = vector.load %arg10[%c0_11, %c0_12] : memref<8x128xf32, #tpu.memory_space<vmem>>, vector<8x128xf32>
      tpu.vector_store %arg10[%c0_11, %c0_12], %12 {strides = array<i32>} : memref<8x128xf32, #tpu.memory_space<vmem>>, vector<8x128xf32>,
    } else {
    }
    %c0 = arith.constant 0 : index
    %c0_1 = arith.constant 0 : index
    %3 = vector.load %arg10[%c0, %c0_1] : memref<8x128xf32, #tpu.memory_space<vmem>>, vector<8x128xf32>
    %c0_2 = arith.constant 0 : index
    %c0_3 = arith.constant 0 : index
    %4 = vector.load %arg2[%c0_2, %c0_3] : memref<8x1024xbf16, #tpu.memory_space<vmem>>, vector<8x1024xbf16>
    %c0_4 = arith.constant 0 : index
    %c0_5 = arith.constant 0 : index
    %5 = vector.load %arg3[%c0_4, %c0_5] : memref<1024x128xbf16, #tpu.memory_space<vmem>>, vector<1024x128xbf16>
    %cst = arith.constant dense<0.000000e+00> : vector<8x128xf32>
    %6 = tpu.matmul %4, %5, %cst {dimension_numbers = #tpu.dot_dimension_numbers<[1], [0], [0], [1], [0, 0, 1, 1], [], []>} : vector<8x1024xbf16>, vector<1024x128xbf16>, vector<8x128xf32> -> vector<8x128xf32>
    %7 = arith.addf %3, %6 : vector<8x128xf32>
    %c0_6 = arith.constant 0 : index
    %c0_7 = arith.constant 0 : index
    %8 = vector.load %arg10[%c0_6, %c0_7] : memref<8x128xf32, #tpu.memory_space<vmem>>, vector<8x128xf32>
    tpu.vector_store %arg10[%c0_6, %c0_7], %7 {strides = array<i32>} : memref<8x128xf32, #tpu.memory_space<vmem>>, vector<8x128xf32>,
    %c0_i32_8 = arith.constant 0 : i32
    %9 = arith.cmpi eq, %arg1, %c0_i32_8 : i32
    %10 = arith.extui %9 : i1 to i32
    %c0_i32_9 = arith.constant 0 : i32
    %11 = arith.cmpi ne, %10, %c0_i32_9 : i32
    scf.if %11 {
      %c0_10 = arith.constant 0 : index
      %c0_11 = arith.constant 0 : index
      %12 = vector.load %arg10[%c0_10, %c0_11] : memref<8x128xf32, #tpu.memory_space<vmem>>, vector<8x128xf32>
      %c0_12 = arith.constant 0 : index
      %c0_13 = arith.constant 0 : index
      %13 = vector.load %arg4[%c0_12, %c0_13] : memref<1x128xf32, #tpu.memory_space<vmem>>, vector<1x128xf32>
      %14 = vector.broadcast %13 : vector<1x128xf32> to vector<8x128xf32>
      %15 = arith.addf %12, %14 : vector<8x128xf32>
      %16 = arith.truncf %15 : vector<8x128xf32> to vector<8x128xbf16>
      %c0_14 = arith.constant 0 : index
      %c0_15 = arith.constant 0 : index
      %17 = vector.load %arg5[%c0_14, %c0_15] : memref<128x128xbf16, #tpu.memory_space<vmem>>, vector<128x128xbf16>
      %cst_16 = arith.constant dense<0.000000e+00> : vector<8x128xf32>
      %18 = tpu.matmul %16, %17, %cst_16 {dimension_numbers = #tpu.dot_dimension_numbers<[1], [0], [0], [1], [0, 0, 1, 1], [], []>} : vector<8x128xbf16>, vector<128x128xbf16>, vector<8x128xf32> -> vector<8x128xf32>
      %c0_17 = arith.constant 0 : index
      %c0_18 = arith.constant 0 : index
      %19 = vector.load %arg6[%c0_17, %c0_18] : memref<1x128xf32, #tpu.memory_space<vmem>>, vector<1x128xf32>
      %20 = vector.broadcast %19 : vector<1x128xf32> to vector<8x128xf32>
      %21 = arith.addf %18, %20 : vector<8x128xf32>
      %cst_19 = arith.constant 0.000000e+00 : f32
      %22 = vector.broadcast %cst_19 : f32 to vector<8x128xf32>
      %23 = arith.maximumf %21, %22 : vector<8x128xf32>
      %24 = arith.truncf %23 : vector<8x128xf32> to vector<8x128xbf16>
      %c0_20 = arith.constant 0 : index
      %c0_21 = arith.constant 0 : index
      %25 = vector.load %arg7[%c0_20, %c0_21] : memref<128x128xbf16, #tpu.memory_space<vmem>>, vector<128x128xbf16>
      %cst_22 = arith.constant dense<0.000000e+00> : vector<8x128xf32>
      %26 = tpu.matmul %24, %25, %cst_22 {dimension_numbers = #tpu.dot_dimension_numbers<[1], [0], [0], [1], [0, 0, 1, 1], [], []>} : vector<8x128xbf16>, vector<128x128xbf16>, vector<8x128xf32> -> vector<8x128xf32>
      %c0_23 = arith.constant 0 : index
      %c0_24 = arith.constant 0 : index
      %27 = vector.load %arg8[%c0_23, %c0_24] : memref<1x128xf32, #tpu.memory_space<vmem>>, vector<1x128xf32>
      %28 = vector.broadcast %27 : vector<1x128xf32> to vector<8x128xf32>
      %29 = arith.addf %26, %28 : vector<8x128xf32>
      %30 = arith.mulf %29, %29 : vector<8x128xf32>
      %cst_25 = arith.constant dense<0.000000e+00> : vector<8xf32>
      %31 = vector.multi_reduction <add>, %30, %cst_25 [1] : vector<8x128xf32> to vector<8xf32>
      %32 = vector.shape_cast %31 : vector<8xf32> to vector<8x1xf32>
      %cst_26 = arith.constant 1.000000e-24 : f32
      %33 = vector.broadcast %cst_26 : f32 to vector<8x1xf32>
      %34 = arith.maximumf %32, %33 : vector<8x1xf32>
      %35 = math.rsqrt %34 : vector<8x1xf32>
      %36 = vector.broadcast %35 : vector<8x1xf32> to vector<8x128xf32>
      %37 = arith.mulf %29, %36 : vector<8x128xf32>
      %c0_27 = arith.constant 0 : index
      %c0_28 = arith.constant 0 : index
      %38 = vector.load %arg9[%c0_27, %c0_28] : memref<8x128xf32, #tpu.memory_space<vmem>>, vector<8x128xf32>
      tpu.vector_store %arg9[%c0_27, %c0_28], %37 {strides = array<i32>} : memref<8x128xf32, #tpu.memory_space<vmem>>, vector<8x128xf32>,
    } else {
    }
    return
  }
  func.func @transform_0(%arg0: i32, %arg1: i32) -> (i32, i32) {
    %c0_i32 = arith.constant 0 : i32
    return %arg0, %arg1 : i32, i32
  }
  func.func @transform_1(%arg0: i32, %arg1: i32) -> (i32, i32) {
    %c0_i32 = arith.constant 0 : i32
    %c0_i32_0 = arith.constant 0 : i32
    return %arg1, %c0_i32 : i32, i32
  }
  func.func @transform_2(%arg0: i32, %arg1: i32) -> (i32, i32) {
    %c0_i32 = arith.constant 0 : i32
    %c0_i32_0 = arith.constant 0 : i32
    %c0_i32_1 = arith.constant 0 : i32
    return %c0_i32, %c0_i32_0 : i32, i32
  }
  func.func @transform_3(%arg0: i32, %arg1: i32) -> (i32, i32) {
    %c0_i32 = arith.constant 0 : i32
    %c0_i32_0 = arith.constant 0 : i32
    %c0_i32_1 = arith.constant 0 : i32
    return %c0_i32, %c0_i32_0 : i32, i32
  }
  func.func @transform_4(%arg0: i32, %arg1: i32) -> (i32, i32) {
    %c0_i32 = arith.constant 0 : i32
    %c0_i32_0 = arith.constant 0 : i32
    %c0_i32_1 = arith.constant 0 : i32
    return %c0_i32, %c0_i32_0 : i32, i32
  }
  func.func @transform_5(%arg0: i32, %arg1: i32) -> (i32, i32) {
    %c0_i32 = arith.constant 0 : i32
    %c0_i32_0 = arith.constant 0 : i32
    %c0_i32_1 = arith.constant 0 : i32
    return %c0_i32, %c0_i32_0 : i32, i32
  }
  func.func @transform_6(%arg0: i32, %arg1: i32) -> (i32, i32) {
    %c0_i32 = arith.constant 0 : i32
    %c0_i32_0 = arith.constant 0 : i32
    %c0_i32_1 = arith.constant 0 : i32
    return %c0_i32, %c0_i32_0 : i32, i32
  }
  func.func @transform_7(%arg0: i32, %arg1: i32) -> (i32, i32) {
    %c0_i32 = arith.constant 0 : i32
    %c0_i32_0 = arith.constant 0 : i32
    return %arg0, %c0_i32 : i32, i32
  }
}

</mosaic_0001>

<bundles_post_ra>
// kernel: tpu_custom_call.1
= control target key start
LH: loop header
LB: loop body
LE: loop exit
PB: predicated region body
PF: predicated region fallthrough
CT: control target
= control target key end

     0   :  { %12 = vsyncpa [#allocation4], 0  ;;  %s1598_s0 = inlined_call_operand.hbm [shape: bf16[8,1024], index: 0, kind: input, shape index: {}]   ;;  %s1599_s1 = inlined_call_operand.hbm [shape: bf16[1024,128], index: 1, kind: input, shape index: {}]   ;;  %s1600_s2 = inlined_call_operand.vmem [shape: f32[1,128], index: 2, kind: input, shape index: {}]   ;;  %s1601_s3 = inlined_call_operand.hbm [shape: bf16[128,128], index: 3, kind: input, shape index: {}]   ;;  %s1602_s4 = inlined_call_operand.vmem [shape: f32[1,128], index: 4, kind: input, shape index: {}]   ;;  %s1603_s5 = inlined_call_operand.hbm [shape: bf16[128,128], index: 5, kind: input, shape index: {}]   ;;  %s1604_s6 = inlined_call_operand.vmem [shape: f32[1,128], index: 6, kind: input, shape index: {}]   ;;  %s1605_s7 = inlined_call_operand.hbm [shape: f32[8,128], index: 7, kind: output, shape index: {}]  }
   0x1   :  { %13 = vsyncpa [#allocation7], 0 }
   0x2   :  { %14 = vsyncpa [#allocation10], 0 }
   0x3   :  { %15 = vsyncpa [#allocation5], 0  ;;  %s1498_s24 = smov [#allocation6]  }
   0x4   :  { %s31_s25 = sshll.u32 %s1498_s24, 4  ;;  %s32_s25 = int_to_ptr.vmem [resolvable:$true] %s31_s25 }
   0x5   :  { %s1398_s26 = scalar_lea.vmem %s32_s25, 8192  ;;  %p1403_p1 = scmp.lt.s32.totalorder %s32_s25, %s32_s25 }
   0x6   :  { %p1399_p0 = scmp.ne.s32.totalorder %s32_s25, %s1398_s26  ;;  %p1404_p2 = scmp.lt.s32.totalorder %s1398_s26, %s1398_s26 }
   0x8   :  { %p1405_p3 = por %p1404_p2, %p1403_p1 }
   0xa   :  { %p1406_p4 = pnand %p1405_p3, %p1399_p0 }
   0xc   :  { %1409 = shalt.err (!%p1406_p4)
}
   0xd   :  { %s1499_s27 = smov 64   ;;  %s1500_s28 = smov 4  }
   0xe   :  { %37 = dma.hbm_to_vmem [thread:$0]  %s1599_s1, 8192, %s32_s25, [#allocation7], %s1499_s27, %s1499_s27, %s1500_s28  }
   0xf   :  { %s1501_s8 = smov [#allocation3]   ;;  %s1502_s10 = smov [#allocation8]  }
  0x10   :  { %s22_s9 = sshll.u32 %s1501_s8, 4  ;;  %s45_s11 = sshll.u32 %s1502_s10, 4  ;;  %s23_s9 = int_to_ptr.vmem [resolvable:$true] %s22_s9  ;;  %s46_s11 = int_to_ptr.vmem [resolvable:$true] %s45_s11 }
  0x11   :  { %s1418_s12 = scalar_lea.vmem %s23_s9, 512  ;;  %p1423_p6 = scmp.lt.s32.totalorder %s23_s9, %s23_s9 }
  0x12   :  { %p1419_p5 = scmp.ne.s32.totalorder %s23_s9, %s1418_s12  ;;  %p1424_p7 = scmp.lt.s32.totalorder %s1418_s12, %s1418_s12 }
  0x14   :  { %p1425_p8 = por %p1424_p7, %p1423_p6 }
  0x16   :  { %p1426_p9 = pnand %p1425_p8, %p1419_p5 }
  0x18   :  { %1429 = shalt.err (!%p1426_p9)
}
  0x19   :  { %25 = dma.hbm_to_vmem [thread:$0]  %s1598_s0, 512, %s23_s9, [#allocation4]  }
  0x1a   :  { %s1438_s15 = scalar_lea.vmem %s46_s11, 1024  ;;  %p1443_p11 = scmp.lt.s32.totalorder %s46_s11, %s46_s11 }
  0x1b   :  { %p1439_p10 = scmp.ne.s32.totalorder %s46_s11, %s1438_s15  ;;  %p1444_p12 = scmp.lt.s32.totalorder %s1438_s15, %s1438_s15 }
  0x1d   :  { %p1445_p13 = por %p1444_p12, %p1443_p11 }
  0x1f   :  { %p1446_p0 = pnand %p1445_p13, %p1439_p10 }
  0x21   :  { %1449 = shalt.err (!%p1446_p0)
}
  0x22   :  { %51 = dma.hbm_to_vmem [thread:$0]  %s1601_s3, 1024, %s46_s11, [#allocation7], %s1499_s27, %s1499_s27, %s1500_s28  }
  0x23   :  { %s1503_s17 = smov [#allocation9]  }
  0x24   :  { %s59_s18 = sshll.u32 %s1503_s17, 4  ;;  %s60_s18 = int_to_ptr.vmem [resolvable:$true] %s59_s18 }
  0x25   :  { %s1458_s19 = scalar_lea.vmem %s60_s18, 1024  ;;  %p1463_p2 = scmp.lt.s32.totalorder %s60_s18, %s60_s18 }
  0x26   :  { %p1459_p1 = scmp.ne.s32.totalorder %s60_s18, %s1458_s19  ;;  %p1464_p3 = scmp.lt.s32.totalorder %s1458_s19, %s1458_s19 }
  0x28   :  { %p1465_p4 = por %p1464_p3, %p1463_p2 }
  0x2a   :  { %p1466_p5 = pnand %p1465_p4, %p1459_p1 }
  0x2c   :  { %1469 = shalt.err (!%p1466_p5)
}
  0x2d   :  { %65 = dma.hbm_to_vmem [thread:$0]  %s1603_s5, 1024, %s60_s18, [#allocation10], %s1499_s27, %s1499_s27, %s1500_s28  }
  0x2e   :  { %1490 = dma.done.wait [#allocation4], 512  }
  0x2f   :  { %1491 = vsyncadd [#allocation4], 4294966784 }
  0x30   :  { %1492 = dma.done.wait [#allocation7], 9216  }
  0x31   :  { %1493 = vsyncadd [#allocation7], 4294958080 }
  0x32   :  { %1494 = dma.done.wait [#allocation10], 1024  }
  0x33   :  { %1495 = vsyncadd [#allocation10], 4294966272  ;;  %v1300_v0 = vld [vmem:[#allocation6 + $0x78] sm:$0xff]   ;;  %v1304_v4 = vld [vmem:[#allocation6 + $0x70] sm:$0xff]   ;;  %vm1505_vm0 = vmmov 0  }
  0x34   :  { %v1301_v1 = vld [vmem:[#allocation6 + $0xf8] sm:$0xff]   ;;  %1145 = vmatprep.subr.bf16.mxu0 %v1300_v0  ;;  %v1305_v5 = vld [vmem:[#allocation6 + $0xf0] sm:$0xff]   ;;  %v1308_v8 = vld [vmem:[#allocation6 + $0x68] sm:$0xff]  }
  0x35   :  { %v1302_v2 = vld [vmem:[#allocation6 + $0x38] sm:$0xff]   ;;  %1167 = vmatprep.subr.bf16.mxu1 %v1301_v1  ;;  %v1306_v6 = vld [vmem:[#allocation6 + $0x30] sm:$0xff]   ;;  %v1309_v9 = vld [vmem:[#allocation6 + $0xe8] sm:$0xff]  }
  0x36   :  { %v1303_v3 = vld [vmem:[#allocation6 + $0xb8] sm:$0xff]   ;;  %1146 = vmatpush3.bf16.msra.mxu0 %v1302_v2  ;;  %v1307_v7 = vld [vmem:[#allocation6 + $0xb0] sm:$0xff]   ;;  %v1310_v10 = vld [vmem:[#allocation6 + $0x28] sm:$0xff]  }
  0x37   :  { %1168 = vmatpush3.bf16.msra.mxu1 %v1303_v3  ;;  %1147 = vmatprep.subr.bf16.mxu0 %v1304_v4  ;;  %v1311_v11 = vld [vmem:[#allocation6 + $0xa8] sm:$0xff]   ;;  %v1312_v12 = vld [vmem:[#allocation6 + $0x60] sm:$0xff]   ;;  %v1316_v16 = vld [vmem:[#allocation6 + $0x58] sm:$0xff]  }
  0x38   :  { %1169 = vmatprep.subr.bf16.mxu1 %v1305_v5  ;;  %v1313_v13 = vld [vmem:[#allocation6 + $0xe0] sm:$0xff]   ;;  %v1317_v17 = vld [vmem:[#allocation6 + $0xd8] sm:$0xff]   ;;  %v1320_v20 = vld [vmem:[#allocation6 + $0x50] sm:$0xff]  }
  0x39   :  { %v1314_v14 = vld [vmem:[#allocation6 + $0x20] sm:$0xff]   ;;  %v1318_v18 = vld [vmem:[#allocation6 + $0x18] sm:$0xff]   ;;  %v1321_v21 = vld [vmem:[#allocation6 + $0xd0] sm:$0xff]  }
  0x3a   :  { %1148 = vmatpush3.bf16.msra.mxu0 %v1306_v6  ;;  %v1315_v15 = vld [vmem:[#allocation6 + $0xa0] sm:$0xff]   ;;  %v1319_v19 = vld [vmem:[#allocation6 + $0x98] sm:$0xff]   ;;  %v1322_v22 = vld [vmem:[#allocation6 + $0x10] sm:$0xff]  }
  0x3b   :  { %1170 = vmatpush3.bf16.msra.mxu1 %v1307_v7  ;;  %1149 = vmatprep.subr.bf16.mxu0 %v1308_v8  ;;  %v1323_v23 = vld [vmem:[#allocation6 + $0x90] sm:$0xff]   ;;  %v1324_v24 = vld [vmem:[#allocation6 + $0x48] sm:$0xff]   ;;  %v1328_v28 = vld [vmem:[#allocation6 + $0x40] sm:$0xff]  }
  0x3c   :  { %1171 = vmatprep.subr.bf16.mxu1 %v1309_v9  ;;  %v1325_v25 = vld [vmem:[#allocation6 + $0xc8] sm:$0xff]   ;;  %v1329_v29 = vld [vmem:[#allocation6 + $0xc0] sm:$0xff]   ;;  %v1336_v38 = vld [vmem:[#allocation6 + $0x178] sm:$0xff]  }
  0x3d   :  { %v1326_v26 = vld [vmem:[#allocation6 + $0x8] sm:$0xff]   ;;  %v1330_v30 = vld [vmem:[#allocation6] sm:$0xff]   ;;  %v1337_v39 = vld [vmem:[#allocation6 + $0x1f8] sm:$0xff]  }
  0x3e   :  { %1150 = vmatpush3.bf16.msra.mxu0 %v1310_v10  ;;  %v1327_v27 = vld [vmem:[#allocation6 + $0x88] sm:$0xff]   ;;  %v1331_v31 = vld [vmem:[#allocation6 + $0x80] sm:$0xff]   ;;  %v1338_v40 = vld [vmem:[#allocation6 + $0x138] sm:$0xff]  }
  0x3f   :  { %1172 = vmatpush3.bf16.msra.mxu1 %v1311_v11  ;;  %1151 = vmatprep.subr.bf16.mxu0 %v1312_v12  ;;  %v87_v32 = vld [vmem:[#allocation3] sm:$0xff]  ;;  %v88_v33 = vld [vmem:[#allocation3 + $0x8] sm:$0xff]  ;;  %v1339_v41 = vld [vmem:[#allocation6 + $0x1b8] sm:$0xff]  }
  0x40   :  { %1173 = vmatprep.subr.bf16.mxu1 %v1313_v13  ;;  %v1054_v34 = vcombine.low %v87_v32, %v87_v32  ;;  %v1055_v35 = vcombine.high %v87_v32, %v87_v32  ;;  %v1056_v36 = vcombine.low %v88_v33, %v88_v33  ;;  %v1057_v37 = vcombine.high %v88_v33, %v88_v33  ;;  %v1340_v42 = vld [vmem:[#allocation6 + $0x170] sm:$0xff]   ;;  %v1344_v46 = vld [vmem:[#allocation6 + $0x168] sm:$0xff]   ;;  %v1348_v50 = vld [vmem:[#allocation6 + $0x160] sm:$0xff]  }
  0x41   :  { %v1341_v43 = vld [vmem:[#allocation6 + $0x1f0] sm:$0xff]   ;;  %v1345_v47 = vld [vmem:[#allocation6 + $0x1e8] sm:$0xff]   ;;  %v1349_v51 = vld [vmem:[#allocation6 + $0x1e0] sm:$0xff]   ;;  %v1504_v13 = vmov 0.0  }
  0x42   :  { %1152 = vmatpush3.bf16.msra.mxu0 %v1314_v14  ;;  %663 = vmatprep.mubr.bf16.mxu0 %v1055_v35  ;;  %v1342_v44 = vld [vmem:[#allocation6 + $0x130] sm:$0xff]   ;;  %v1346_v48 = vld [vmem:[#allocation6 + $0x128] sm:$0xff]   ;;  %v1350_v52 = vld [vmem:[#allocation6 + $0x120] sm:$0xff]  }
  0x43   :  { %1174 = vmatpush3.bf16.msra.mxu1 %v1315_v15  ;;  %1153 = vmatprep.subr.bf16.mxu0 %v1316_v16  ;;  %v1343_v45 = vld [vmem:[#allocation6 + $0x1b0] sm:$0xff]   ;;  %v1347_v49 = vld [vmem:[#allocation6 + $0x1a8] sm:$0xff]   ;;  %v1351_v53 = vld [vmem:[#allocation6 + $0x1a0] sm:$0xff]  }
  0x44   :  { %1175 = vmatprep.subr.bf16.mxu1 %v1317_v17  ;;  %703 = vmatprep.mubr.bf16.mxu1 %v1057_v37  ;;  %v1352_v54 = vld [vmem:[#allocation6 + $0x158] sm:$0xff]   ;;  %v1356_v58 = vld [vmem:[#allocation6 + $0x150] sm:$0xff]   ;;  %v1360_v62 = vld [vmem:[#allocation6 + $0x148] sm:$0xff]  }
  0x45   :  { %v1353_v55 = vld [vmem:[#allocation6 + $0x1d8] sm:$0xff]   ;;  %v1357_v59 = vld [vmem:[#allocation6 + $0x1d0] sm:$0xff]   ;;  %v1361_v63 = vld [vmem:[#allocation6 + $0x1c8] sm:$0xff]  }
  0x46   :  { %1154 = vmatpush3.bf16.msra.mxu0 %v1318_v18  ;;  %v1354_v56 = vld [vmem:[#allocation6 + $0x118] sm:$0xff]   ;;  %v1358_v60 = vld [vmem:[#allocation6 + $0x110] sm:$0xff]   ;;  %v1362_v0 = vld [vmem:[#allocation6 + $0x108] sm:$0xff]  }
  0x47   :  { %1176 = vmatpush3.bf16.msra.mxu1 %v1319_v19  ;;  %1155 = vmatprep.subr.bf16.mxu0 %v1320_v20  ;;  %v1355_v57 = vld [vmem:[#allocation6 + $0x198] sm:$0xff]   ;;  %v1359_v61 = vld [vmem:[#allocation6 + $0x190] sm:$0xff]   ;;  %v1363_v1 = vld [vmem:[#allocation6 + $0x188] sm:$0xff]  }
  0x48   :  { %1177 = vmatprep.subr.bf16.mxu1 %v1321_v21  ;;  %v1364_v2 = vld [vmem:[#allocation6 + $0x140] sm:$0xff]   ;;  %v89_v6 = vld [vmem:[#allocation3 + $0x10] sm:$0xff]  ;;  %v90_v9 = vld [vmem:[#allocation3 + $0x18] sm:$0xff] }
  0x49   :  { %v1365_v3 = vld [vmem:[#allocation6 + $0x1c0] sm:$0xff]   ;;  %v1058_v7 = vcombine.low %v89_v6, %v89_v6  ;;  %v1059_v8 = vcombine.high %v89_v6, %v89_v6  ;;  %v1060_v10 = vcombine.low %v90_v9, %v90_v9  ;;  %v1061_v11 = vcombine.high %v90_v9, %v90_v9  ;;  %v1372_v12 = vld [vmem:[#allocation8 + $0x38] sm:$0xff]   ;;  %v1373_v14 = vld [vmem:[#allocation8 + $0x30] sm:$0xff]  }
  0x4a   :  { %1156 = vmatpush3.bf16.msra.mxu0 %v1322_v22  ;;  %v1366_v4 = vld [vmem:[#allocation6 + $0x100] sm:$0xff]   ;;  %v1374_v15 = vld [vmem:[#allocation8 + $0x28] sm:$0xff]   ;;  %v1376_v17 = vld [vmem:[#allocation8 + $0x18] sm:$0xff]  }
  0x4b   :  { %1178 = vmatpush3.bf16.msra.mxu1 %v1323_v23  ;;  %1157 = vmatprep.subr.bf16.mxu0 %v1324_v24  ;;  %v1367_v5 = vld [vmem:[#allocation6 + $0x180] sm:$0xff]   ;;  %v1377_v18 = vld [vmem:[#allocation8 + $0x10] sm:$0xff]   ;;  %v1378_v19 = vld [vmem:[#allocation8 + $0x8] sm:$0xff]  }
  0x4c   :  { %1179 = vmatprep.subr.bf16.mxu1 %v1325_v25  ;;  %v1375_v16 = vld [vmem:[#allocation8 + $0x20] sm:$0xff]   ;;  %v1380_v21 = vld [vmem:[#allocation9 + $0x38] sm:$0xff]   ;;  %v1381_v22 = vld [vmem:[#allocation9 + $0x30] sm:$0xff]  }
  0x4d   :  { %v1379_v20 = vld [vmem:[#allocation8] sm:$0xff]   ;;  %v1382_v23 = vld [vmem:[#allocation9 + $0x28] sm:$0xff]   ;;  %v1384_v25 = vld [vmem:[#allocation9 + $0x18] sm:$0xff]  }
  0x4e   :  { %1158 = vmatpush3.bf16.msra.mxu0 %v1326_v26  ;;  %v1383_v24 = vld [vmem:[#allocation9 + $0x20] sm:$0xff]   ;;  %v1385_v26 = vld [vmem:[#allocation9 + $0x10] sm:$0xff]  }
  0x4f   :  { %1180 = vmatpush3.bf16.msra.mxu1 %v1327_v27  ;;  %1159 = vmatprep.subr.bf16.mxu0 %v1328_v28 }
  0x50   :  { %1181 = vmatprep.subr.bf16.mxu1 %v1329_v29 }
  0x52   :  { %1160 = vmatpush3.bf16.msra.mxu0 %v1330_v30 }
  0x53   :  { %1182 = vmatpush3.bf16.msra.mxu1 %v1331_v31  ;;  %1189 = vmatprep.subr.bf16.mxu0 %v1336_v38 }
  0x54   :  { %1211 = vmatprep.subr.bf16.mxu1 %v1337_v39 }
  0x55   :  { %664 = vmatmul.mubr.bf16.vlgmr.msra.gmra.mxu0 %v1054_v34 }
  0x56   :  { %704 = vmatmul.mubr.bf16.vlgmr.msra.gmra.mxu1 %v1056_v36  ;;  %1190 = vmatpush3.bf16.msra.mxu0 %v1338_v40 }
  0x57   :  { %1212 = vmatpush3.bf16.msra.mxu1 %v1339_v41  ;;  %1191 = vmatprep.subr.bf16.mxu0 %v1340_v42 }
  0x58   :  { %1213 = vmatprep.subr.bf16.mxu1 %v1341_v43  ;;  %743 = vmatprep.mubr.bf16.mxu0 %v1059_v8 }
  0x59   :  { %783 = vmatprep.mubr.bf16.mxu1 %v1061_v11 }
  0x5a   :  { %1192 = vmatpush3.bf16.msra.mxu0 %v1342_v44 }
  0x5b   :  { %1214 = vmatpush3.bf16.msra.mxu1 %v1343_v45  ;;  %1193 = vmatprep.subr.bf16.mxu0 %v1344_v46 }
  0x5c   :  { %1215 = vmatprep.subr.bf16.mxu1 %v1345_v47  ;;  %v1126_v47 = vld [vmem:[%s1600_s2] ss:$0 sm:$0xff] }
  0x5e   :  { %1194 = vmatpush3.bf16.msra.mxu0 %v1346_v48 }
  0x5f   :  { %1216 = vmatpush3.bf16.msra.mxu1 %v1347_v49  ;;  %1195 = vmatprep.subr.bf16.mxu0 %v1348_v50 }
  0x60   :  { %1217 = vmatprep.subr.bf16.mxu1 %v1349_v51 }
  0x62   :  { %1196 = vmatpush3.bf16.msra.mxu0 %v1350_v52 }
  0x63   :  { %1218 = vmatpush3.bf16.msra.mxu1 %v1351_v53  ;;  %1197 = vmatprep.subr.bf16.mxu0 %v1352_v54  ;;  %v1386_v53 = vld [vmem:[#allocation9 + $0x8] sm:$0xff]   ;;  %v1387_v54 = vld [vmem:[#allocation9] sm:$0xff]  }
  0x64   :  { %1219 = vmatprep.subr.bf16.mxu1 %v1353_v55  ;;  %v1127_v55 = vld [vmem:[%s1602_s4] ss:$0 sm:$0xff]  ;;  %s1506_s4 = smov [#allocation11]  }
  0x65   :  { %s1043_s24 = sshll.u32 %s1506_s4, 4  ;;  %s1044_s24 = int_to_ptr.vmem [resolvable:$true] %s1043_s24 }
  0x66   :  { %1198 = vmatpush3.bf16.msra.mxu0 %v1354_v56  ;;  %s1470_s25 = scalar_lea.vmem %s1044_s24, 128  ;;  %p1475_p7 = scmp.lt.s32.totalorder %s1044_s24, %s1044_s24 }
  0x67   :  { %1220 = vmatpush3.bf16.msra.mxu1 %v1355_v57  ;;  %1199 = vmatprep.subr.bf16.mxu0 %v1356_v58  ;;  %p1471_p6 = scmp.ne.s32.totalorder %s1044_s24, %s1470_s25  ;;  %p1476_p8 = scmp.lt.s32.totalorder %s1470_s25, %s1470_s25 }
  0x68   :  { %1221 = vmatprep.subr.bf16.mxu1 %v1357_v59 }
  0x69   :  { %p1477_p9 = por %p1476_p8, %p1475_p7 }
  0x6a   :  { %1200 = vmatpush3.bf16.msra.mxu0 %v1358_v60 }
  0x6b   :  { %1222 = vmatpush3.bf16.msra.mxu1 %v1359_v61  ;;  %1201 = vmatprep.subr.bf16.mxu0 %v1360_v62  ;;  %p1478_p10 = pnand %p1477_p9, %p1471_p6 }
  0x6c   :  { %1223 = vmatprep.subr.bf16.mxu1 %v1361_v63  ;;  %v1136_v63 = vld [vmem:[%s1604_s6] ss:$0 sm:$0xff] }
  0x6e   :  { %1202 = vmatpush3.bf16.msra.mxu0 %v1362_v0 }
  0x6f   :  { %1224 = vmatpush3.bf16.msra.mxu1 %v1363_v1  ;;  %1203 = vmatprep.subr.bf16.mxu0 %v1364_v2 }
  0x70   :  { %1225 = vmatprep.subr.bf16.mxu1 %v1365_v3 }
  0x72   :  { %1204 = vmatpush3.bf16.msra.mxu0 %v1366_v4 }
  0x73   :  { %1226 = vmatpush3.bf16.msra.mxu1 %v1367_v5  ;;  %1251 = vmatprep.subr.bf16.mxu0 %v1504_v13 }
  0x74   :  { %1271 = vmatprep.subr.bf16.mxu1 %v1504_v13 }
  0x75   :  { %744 = vmatmul.mubr.bf16.vlgmr.msra.gmra.mxu0 %v1058_v7 }
  0x76   :  { %784 = vmatmul.mubr.bf16.vlgmr.msra.gmra.mxu1 %v1060_v10  ;;  %1252 = vmatpush3.bf16.msra.mxu0 %v1372_v12 }
  0x77   :  { %1253 = vmatprep.subr.bf16.mxu0 %v1504_v13  ;;  %1267 = vmatprep.mubr.msk.bf16.mxu0 %vm1505_vm0, %v1504_v13 }
  0x78   :  { %1287 = vmatprep.mubr.msk.bf16.mxu1 %vm1505_vm0, %v1504_v13  ;;  %1272 = vmatpush3.bf16.msra.mxu1 %v1380_v21 }
  0x79   :  { %1273 = vmatprep.subr.bf16.mxu1 %v1504_v13 }
  0x7a   :  { %1254 = vmatpush3.bf16.msra.mxu0 %v1373_v14 }
  0x7b   :  { %1255 = vmatprep.subr.bf16.mxu0 %v1504_v13 }
  0x7c   :  { %1274 = vmatpush3.bf16.msra.mxu1 %v1381_v22 }
  0x7d   :  { %1275 = vmatprep.subr.bf16.mxu1 %v1504_v13 }
  0x7e   :  { %1256 = vmatpush3.bf16.msra.mxu0 %v1374_v15 }
  0x7f   :  { %1257 = vmatprep.subr.bf16.mxu0 %v1504_v13 }
  0x80   :  { %1276 = vmatpush3.bf16.msra.mxu1 %v1382_v23 }
  0x81   :  { %1277 = vmatprep.subr.bf16.mxu1 %v1504_v13 }
  0x82   :  { %1258 = vmatpush3.bf16.msra.mxu0 %v1375_v16 }
  0x83   :  { %1259 = vmatprep.subr.bf16.mxu0 %v1504_v13 }
  0x84   :  { %1278 = vmatpush3.bf16.msra.mxu1 %v1383_v24 }
  0x85   :  { %1279 = vmatprep.subr.bf16.mxu1 %v1504_v13 }
  0x86   :  { %1260 = vmatpush3.bf16.msra.mxu0 %v1376_v17 }
  0x87   :  { %1261 = vmatprep.subr.bf16.mxu0 %v1504_v13 }
  0x88   :  { %1280 = vmatpush3.bf16.msra.mxu1 %v1384_v25 }
  0x89   :  { %1281 = vmatprep.subr.bf16.mxu1 %v1504_v13 }
  0x8a   :  { %1262 = vmatpush3.bf16.msra.mxu0 %v1377_v18 }
  0x8b   :  { %1263 = vmatprep.subr.bf16.mxu0 %v1504_v13 }
  0x8c   :  { %1282 = vmatpush3.bf16.msra.mxu1 %v1385_v26 }
  0x8d   :  { %1283 = vmatprep.subr.bf16.mxu1 %v1504_v13 }
  0x8e   :  { %1264 = vmatpush3.bf16.msra.mxu0 %v1378_v19 }
  0x8f   :  { %1265 = vmatprep.subr.bf16.mxu0 %v1504_v13 }
  0x90   :  { %1284 = vmatpush3.bf16.msra.mxu1 %v1386_v53 }
  0x91   :  { %1285 = vmatprep.subr.bf16.mxu1 %v1504_v13 }
  0x92   :  { %1266 = vmatpush3.bf16.msra.mxu0 %v1379_v20 }
  0x94   :  { %1286 = vmatpush3.bf16.msra.mxu1 %v1387_v54 }
 0x115   :  { %v1161_v27 = vpop.f32.mrf.mxu0 }
 0x116   :  { %v1183_v28 = vpop.f32.mrf.mxu1 }
 0x117   :  { %v1162_v29 = vpop.f32.mrf.mxu0 }
 0x118   :  { %v1184_v30 = vpop.f32.mrf.mxu1  ;;  %v1163_v35 = vadd.f32 %v1162_v29, %v1161_v27 }
 0x119   :  { %v1164_v31 = vpop.f32.mrf.mxu0  ;;  %v1185_v36 = vadd.f32 %v1184_v30, %v1183_v28 }
 0x11a   :  { %v1186_v32 = vpop.f32.mrf.mxu1 }
 0x11b   :  { %v1165_v33 = vpop.f32.mrf.mxu0  ;;  %v706_v41 = vadd.f32 %v1185_v36, %v1163_v35 }
 0x11c   :  { %v1187_v34 = vpop.f32.mrf.mxu1 }
 0x135   :  { %v1205_v37 = vpop.f32.mrf.mxu0 }
 0x136   :  { %v1227_v38 = vpop.f32.mrf.mxu1 }
 0x137   :  { %v1206_v39 = vpop.f32.mrf.mxu0 }
 0x138   :  { %v1228_v40 = vpop.f32.mrf.mxu1  ;;  %v1207_v42 = vadd.f32 %v1206_v39, %v1205_v37 }
 0x139   :  { %v1208_v43 = vpop.f32.mrf.mxu0  ;;  %v1229_v46 = vadd.f32 %v1228_v40, %v1227_v38 }
 0x13a   :  { %v1230_v44 = vpop.f32.mrf.mxu1  ;;  %v746_v45 = vadd.f32 %v1207_v42, %v706_v41 }
 0x13b   :  { %v1209_v48 = vpop.f32.mrf.mxu0 }
 0x13c   :  { %v1231_v49 = vpop.f32.mrf.mxu1  ;;  %v786_v50 = vadd.f32 %v1229_v46, %v746_v45 }
 0x13e   :  { %v804_v51 = vadd.f32 %v1126_v47, %v786_v50 }
 0x140   :  { %v805_v52 = vpack.c.bf16 %v804_v51, %v804_v51 }
 0x142   :  { %1268 = vmatmul.mubr.bf16.vlgmr.msra.gmra.mxu0 %v805_v52 }
 0x202   :  { %v911_v56 = vpop.f32.mrf.mxu0 }
 0x203   :  { %v912_v57 = vadd.f32 %v1127_v55, %v911_v56 }
 0x204   :  { %v1269_v58 = vpop.f32.mrf.mxu0 }
 0x205   :  { %v917_v59 = vmax.f32 %v912_v57, 0.0 }
 0x206   :  { %v914_v60 = vpop.f32.mrf.mxu0 }
 0x207   :  { %v918_v61 = vpack.c.bf16 %v917_v59, %v917_v59 }
 0x208   :  { %v1270_v62 = vpop.f32.mrf.mxu0 }
 0x209   :  { %1288 = vmatmul.mubr.bf16.vlgmr.msra.gmra.mxu1 %v918_v61 }
 0x2c9   :  { %v1024_v0 = vpop.f32.mrf.mxu1 }
 0x2ca   :  { %v1025_v1 = vadd.f32 %v1136_v63, %v1024_v0 }
 0x2cb   :  { %v1289_v2 = vpop.f32.mrf.mxu1 }
 0x2cc   :  { %v1030_v3 = vmul.f32 %v1025_v1, %v1025_v1 }
 0x2cd   :  { %v1027_v4 = vpop.f32.mrf.mxu1 }
 0x2ce   :  { %1031 = vadd.xlane.f32.xlu0 %v1030_v3 }
 0x2cf   :  { %v1290_v5 = vpop.f32.mrf.mxu1 }
 0x357   :  { %v1032_v6 = vpop.xlane.xlu0 %1031 }
 0x358   :  { %v1033_v7 = vmax.f32 %v1032_v6, 1e-24 }
 0x35a   :  { %1388 = vrsqrt.f32 %v1033_v7 }
 0x367   :  { %v1389_v8 = vpop.eup %1388 }
 0x368   :  { %v1035_v9 = vmul.f32 %v1389_v8, %v1025_v1 }
 0x36a   :  { %1036 = vst [vmem:[#allocation11] sm:$0xff] %v1035_v9 }
 0x36b   :  { %1481 = shalt.err (!%p1478_p10)
}
 0x36c   :  { %1046 = dma.vmem_to_hbm [thread:$0]  %s1044_s24, 128, %s1605_s7, [#allocation5]  }
 0x36d   :  { %1496 = dma.done.wait [#allocation5], 128  }
 0x36e   :  { %1497 = vsyncadd [#allocation5], 4294967168 }
 0x36f   :  { %1050 = vsyncpa [#allocation4], 1 }
 0x370   :  { %1051 = vsyncpa [#allocation7], 1 }
 0x371   :  { %1052 = vsyncpa [#allocation10], 1 }
 0x372   :  { %1053 = vsyncpa [#allocation5], 1 }

// kernel: tpu_custom_call.1
= control target key start
LH: loop header
LB: loop body
LE: loop exit
PB: predicated region body
PF: predicated region fallthrough
CT: control target
= control target key end

     0   :  { %12 = vsyncpa [#allocation4], 0  ;;  %s1598_s0 = inlined_call_operand.hbm [shape: bf16[8,1024], index: 0, kind: input, shape index: {}]   ;;  %s1599_s1 = inlined_call_operand.hbm [shape: bf16[1024,128], index: 1, kind: input, shape index: {}]   ;;  %s1600_s2 = inlined_call_operand.vmem [shape: f32[1,128], index: 2, kind: input, shape index: {}]   ;;  %s1601_s3 = inlined_call_operand.hbm [shape: bf16[128,128], index: 3, kind: input, shape index: {}]   ;;  %s1602_s4 = inlined_call_operand.vmem [shape: f32[1,128], index: 4, kind: input, shape index: {}]   ;;  %s1603_s5 = inlined_call_operand.hbm [shape: bf16[128,128], index: 5, kind: input, shape index: {}]   ;;  %s1604_s6 = inlined_call_operand.vmem [shape: f32[1,128], index: 6, kind: input, shape index: {}]   ;;  %s1605_s7 = inlined_call_operand.hbm [shape: f32[8,128], index: 7, kind: output, shape index: {}]  }
   0x1   :  { %13 = vsyncpa [#allocation7], 0 }
   0x2   :  { %14 = vsyncpa [#allocation10], 0 }
   0x3   :  { %15 = vsyncpa [#allocation5], 0  ;;  %s1498_s24 = smov [#allocation6]  }
   0x4   :  { %s31_s25 = sshll.u32 %s1498_s24, 4  ;;  %s32_s25 = int_to_ptr.vmem [resolvable:$true] %s31_s25 }
   0x5   :  { %s1398_s26 = scalar_lea.vmem %s32_s25, 8192  ;;  %p1403_p1 = scmp.lt.s32.totalorder %s32_s25, %s32_s25 }
   0x6   :  { %p1399_p0 = scmp.ne.s32.totalorder %s32_s25, %s1398_s26  ;;  %p1404_p2 = scmp.lt.s32.totalorder %s1398_s26, %s1398_s26 }
   0x8   :  { %p1405_p3 = por %p1404_p2, %p1403_p1 }
   0xa   :  { %p1406_p4 = pnand %p1405_p3, %p1399_p0 }
   0xc   :  { %1409 = shalt.err (!%p1406_p4)
}
   0xd   :  { %s1499_s27 = smov 64   ;;  %s1500_s28 = smov 4  }
   0xe   :  { %37 = dma.hbm_to_vmem [thread:$0]  %s1599_s1, 8192, %s32_s25, [#allocation7], %s1499_s27, %s1499_s27, %s1500_s28  }
   0xf   :  { %s1501_s8 = smov [#allocation3]   ;;  %s1502_s10 = smov [#allocation8]  }
  0x10   :  { %s22_s9 = sshll.u32 %s1501_s8, 4  ;;  %s45_s11 = sshll.u32 %s1502_s10, 4  ;;  %s23_s9 = int_to_ptr.vmem [resolvable:$true] %s22_s9  ;;  %s46_s11 = int_to_ptr.vmem [resolvable:$true] %s45_s11 }
  0x11   :  { %s1418_s12 = scalar_lea.vmem %s23_s9, 512  ;;  %p1423_p6 = scmp.lt.s32.totalorder %s23_s9, %s23_s9 }
  0x12   :  { %p1419_p5 = scmp.ne.s32.totalorder %s23_s9, %s1418_s12  ;;  %p1424_p7 = scmp.lt.s32.totalorder %s1418_s12, %s1418_s12 }
  0x14   :  { %p1425_p8 = por %p1424_p7, %p1423_p6 }
  0x16   :  { %p1426_p9 = pnand %p1425_p8, %p1419_p5 }
  0x18   :  { %1429 = shalt.err (!%p1426_p9)
}
  0x19   :  { %25 = dma.hbm_to_vmem [thread:$0]  %s1598_s0, 512, %s23_s9, [#allocation4]  }
  0x1a   :  { %s1438_s15 = scalar_lea.vmem %s46_s11, 1024  ;;  %p1443_p11 = scmp.lt.s32.totalorder %s46_s11, %s46_s11 }
  0x1b   :  { %p1439_p10 = scmp.ne.s32.totalorder %s46_s11, %s1438_s15  ;;  %p1444_p12 = scmp.lt.s32.totalorder %s1438_s15, %s1438_s15 }
  0x1d   :  { %p1445_p13 = por %p1444_p12, %p1443_p11 }
  0x1f   :  { %p1446_p0 = pnand %p1445_p13, %p1439_p10 }
  0x21   :  { %1449 = shalt.err (!%p1446_p0)
}
  0x22   :  { %51 = dma.hbm_to_vmem [thread:$0]  %s1601_s3, 1024, %s46_s11, [#allocation7], %s1499_s27, %s1499_s27, %s1500_s28  }
  0x23   :  { %s1503_s17 = smov [#allocation9]  }
  0x24   :  { %s59_s18 = sshll.u32 %s1503_s17, 4  ;;  %s60_s18 = int_to_ptr.vmem [resolvable:$true] %s59_s18 }
  0x25   :  { %s1458_s19 = scalar_lea.vmem %s60_s18, 1024  ;;  %p1463_p2 = scmp.lt.s32.totalorder %s60_s18, %s60_s18 }
  0x26   :  { %p1459_p1 = scmp.ne.s32.totalorder %s60_s18, %s1458_s19  ;;  %p1464_p3 = scmp.lt.s32.totalorder %s1458_s19, %s1458_s19 }
  0x28   :  { %p1465_p4 = por %p1464_p3, %p1463_p2 }
  0x2a   :  { %p1466_p5 = pnand %p1465_p4, %p1459_p1 }
  0x2c   :  { %1469 = shalt.err (!%p1466_p5)
}
  0x2d   :  { %65 = dma.hbm_to_vmem [thread:$0]  %s1603_s5, 1024, %s60_s18, [#allocation10], %s1499_s27, %s1499_s27, %s1500_s28  }
  0x2e   :  { %1490 = dma.done.wait [#allocation4], 512  }
  0x2f   :  { %1491 = vsyncadd [#allocation4], 4294966784 }
  0x30   :  { %1492 = dma.done.wait [#allocation7], 9216  }
  0x31   :  { %1493 = vsyncadd [#allocation7], 4294958080 }
  0x32   :  { %1494 = dma.done.wait [#allocation10], 1024  }
  0x33   :  { %1495 = vsyncadd [#allocation10], 4294966272  ;;  %v1300_v0 = vld [vmem:[#allocation6 + $0x78] sm:$0xff]   ;;  %v1304_v4 = vld [vmem:[#allocation6 + $0x70] sm:$0xff]   ;;  %vm1505_vm0 = vmmov 0  }
  0x34   :  { %v1301_v1 = vld [vmem:[#allocation6 + $0xf8] sm:$0xff]   ;;  %1145 = vmatprep.subr.bf16.mxu0 %v1300_v0  ;;  %v1305_v5 = vld [vmem:[#allocation6 + $0xf0] sm:$0xff]   ;;  %v1308_v8 = vld [vmem:[#allocation6 + $0x68] sm:$0xff]  }
  0x35   :  { %v1302_v2 = vld [vmem:[#allocation6 + $0x38] sm:$0xff]   ;;  %1167 = vmatprep.subr.bf16.mxu1 %v1301_v1  ;;  %v1306_v6 = vld [vmem:[#allocation6 + $0x30] sm:$0xff]   ;;  %v1309_v9 = vld [vmem:[#allocation6 + $0xe8] sm:$0xff]  }
  0x36   :  { %v1303_v3 = vld [vmem:[#allocation6 + $0xb8] sm:$0xff]   ;;  %1146 = vmatpush3.bf16.msra.mxu0 %v1302_v2  ;;  %v1307_v7 = vld [vmem:[#allocation6 + $0xb0] sm:$0xff]   ;;  %v1310_v10 = vld [vmem:[#allocation6 + $0x28] sm:$0xff]  }
  0x37   :  { %1168 = vmatpush3.bf16.msra.mxu1 %v1303_v3  ;;  %1147 = vmatprep.subr.bf16.mxu0 %v1304_v4  ;;  %v1311_v11 = vld [vmem:[#allocation6 + $0xa8] sm:$0xff]   ;;  %v1312_v12 = vld [vmem:[#allocation6 + $0x60] sm:$0xff]   ;;  %v1316_v16 = vld [vmem:[#allocation6 + $0x58] sm:$0xff]  }
  0x38   :  { %1169 = vmatprep.subr.bf16.mxu1 %v1305_v5  ;;  %v1313_v13 = vld [vmem:[#allocation6 + $0xe0] sm:$0xff]   ;;  %v1317_v17 = vld [vmem:[#allocation6 + $0xd8] sm:$0xff]   ;;  %v1320_v20 = vld [vmem:[#allocation6 + $0x50] sm:$0xff]  }
  0x39   :  { %v1314_v14 = vld [vmem:[#allocation6 + $0x20] sm:$0xff]   ;;  %v1318_v18 = vld [vmem:[#allocation6 + $0x18] sm:$0xff]   ;;  %v1321_v21 = vld [vmem:[#allocation6 + $0xd0] sm:$0xff]  }
  0x3a   :  { %1148 = vmatpush3.bf16.msra.mxu0 %v1306_v6  ;;  %v1315_v15 = vld [vmem:[#allocation6 + $0xa0] sm:$0xff]   ;;  %v1319_v19 = vld [vmem:[#allocation6 + $0x98] sm:$0xff]   ;;  %v1322_v22 = vld [vmem:[#allocation6 + $0x10] sm:$0xff]  }
  0x3b   :  { %1170 = vmatpush3.bf16.msra.mxu1 %v1307_v7  ;;  %1149 = vmatprep.subr.bf16.mxu0 %v1308_v8  ;;  %v1323_v23 = vld [vmem:[#allocation6 + $0x90] sm:$0xff]   ;;  %v1324_v24 = vld [vmem:[#allocation6 + $0x48] sm:$0xff]   ;;  %v1328_v28 = vld [vmem:[#allocation6 + $0x40] sm:$0xff]  }
  0x3c   :  { %1171 = vmatprep.subr.bf16.mxu1 %v1309_v9  ;;  %v1325_v25 = vld [vmem:[#allocation6 + $0xc8] sm:$0xff]   ;;  %v1329_v29 = vld [vmem:[#allocation6 + $0xc0] sm:$0xff]   ;;  %v1336_v38 = vld [vmem:[#allocation6 + $0x178] sm:$0xff]  }
  0x3d   :  { %v1326_v26 = vld [vmem:[#allocation6 + $0x8] sm:$0xff]   ;;  %v1330_v30 = vld [vmem:[#allocation6] sm:$0xff]   ;;  %v1337_v39 = vld [vmem:[#allocation6 + $0x1f8] sm:$0xff]  }
  0x3e   :  { %1150 = vmatpush3.bf16.msra.mxu0 %v1310_v10  ;;  %v1327_v27 = vld [vmem:[#allocation6 + $0x88] sm:$0xff]   ;;  %v1331_v31 = vld [vmem:[#allocation6 + $0x80] sm:$0xff]   ;;  %v1338_v40 = vld [vmem:[#allocation6 + $0x138] sm:$0xff]  }
  0x3f   :  { %1172 = vmatpush3.bf16.msra.mxu1 %v1311_v11  ;;  %1151 = vmatprep.subr.bf16.mxu0 %v1312_v12  ;;  %v87_v32 = vld [vmem:[#allocation3] sm:$0xff]  ;;  %v88_v33 = vld [vmem:[#allocation3 + $0x8] sm:$0xff]  ;;  %v1339_v41 = vld [vmem:[#allocation6 + $0x1b8] sm:$0xff]  }
  0x40   :  { %1173 = vmatprep.subr.bf16.mxu1 %v1313_v13  ;;  %v1054_v34 = vcombine.low %v87_v32, %v87_v32  ;;  %v1055_v35 = vcombine.high %v87_v32, %v87_v32  ;;  %v1056_v36 = vcombine.low %v88_v33, %v88_v33  ;;  %v1057_v37 = vcombine.high %v88_v33, %v88_v33  ;;  %v1340_v42 = vld [vmem:[#allocation6 + $0x170] sm:$0xff]   ;;  %v1344_v46 = vld [vmem:[#allocation6 + $0x168] sm:$0xff]   ;;  %v1348_v50 = vld [vmem:[#allocation6 + $0x160] sm:$0xff]  }
  0x41   :  { %v1341_v43 = vld [vmem:[#allocation6 + $0x1f0] sm:$0xff]   ;;  %v1345_v47 = vld [vmem:[#allocation6 + $0x1e8] sm:$0xff]   ;;  %v1349_v51 = vld [vmem:[#allocation6 + $0x1e0] sm:$0xff]   ;;  %v1504_v13 = vmov 0.0  }
  0x42   :  { %1152 = vmatpush3.bf16.msra.mxu0 %v1314_v14  ;;  %663 = vmatprep.mubr.bf16.mxu0 %v1055_v35  ;;  %v1342_v44 = vld [vmem:[#allocation6 + $0x130] sm:$0xff]   ;;  %v1346_v48 = vld [vmem:[#allocation6 + $0x128] sm:$0xff]   ;;  %v1350_v52 = vld [vmem:[#allocation6 + $0x120] sm:$0xff]  }
  0x43   :  { %1174 = vmatpush3.bf16.msra.mxu1 %v1315_v15  ;;  %1153 = vmatprep.subr.bf16.mxu0 %v1316_v16  ;;  %v1343_v45 = vld [vmem:[#allocation6 + $0x1b0] sm:$0xff]   ;;  %v1347_v49 = vld [vmem:[#allocation6 + $0x1a8] sm:$0xff]   ;;  %v1351_v53 = vld [vmem:[#allocation6 + $0x1a0] sm:$0xff]  }
  0x44   :  { %1175 = vmatprep.subr.bf16.mxu1 %v1317_v17  ;;  %703 = vmatprep.mubr.bf16.mxu1 %v1057_v37  ;;  %v1352_v54 = vld [vmem:[#allocation6 + $0x158] sm:$0xff]   ;;  %v1356_v58 = vld [vmem:[#allocation6 + $0x150] sm:$0xff]   ;;  %v1360_v62 = vld [vmem:[#allocation6 + $0x148] sm:$0xff]  }
  0x45   :  { %v1353_v55 = vld [vmem:[#allocation6 + $0x1d8] sm:$0xff]   ;;  %v1357_v59 = vld [vmem:[#allocation6 + $0x1d0] sm:$0xff]   ;;  %v1361_v63 = vld [vmem:[#allocation6 + $0x1c8] sm:$0xff]  }
  0x46   :  { %1154 = vmatpush3.bf16.msra.mxu0 %v1318_v18  ;;  %v1354_v56 = vld [vmem:[#allocation6 + $0x118] sm:$0xff]   ;;  %v1358_v60 = vld [vmem:[#allocation6 + $0x110] sm:$0xff]   ;;  %v1362_v0 = vld [vmem:[#allocation6 + $0x108] sm:$0xff]  }
  0x47   :  { %1176 = vmatpush3.bf16.msra.mxu1 %v1319_v19  ;;  %1155 = vmatprep.subr.bf16.mxu0 %v1320_v20  ;;  %v1355_v57 = vld [vmem:[#allocation6 + $0x198] sm:$0xff]   ;;  %v1359_v61 = vld [vmem:[#allocation6 + $0x190] sm:$0xff]   ;;  %v1363_v1 = vld [vmem:[#allocation6 + $0x188] sm:$0xff]  }
  0x48   :  { %1177 = vmatprep.subr.bf16.mxu1 %v1321_v21  ;;  %v1364_v2 = vld [vmem:[#allocation6 + $0x140] sm:$0xff]   ;;  %v89_v6 = vld [vmem:[#allocation3 + $0x10] sm:$0xff]  ;;  %v90_v9 = vld [vmem:[#allocation3 + $0x18] sm:$0xff] }
  0x49   :  { %v1365_v3 = vld [vmem:[#allocation6 + $0x1c0] sm:$0xff]   ;;  %v1058_v7 = vcombine.low %v89_v6, %v89_v6  ;;  %v1059_v8 = vcombine.high %v89_v6, %v89_v6  ;;  %v1060_v10 = vcombine.low %v90_v9, %v90_v9  ;;  %v1061_v11 = vcombine.high %v90_v9, %v90_v9  ;;  %v1372_v12 = vld [vmem:[#allocation8 + $0x38] sm:$0xff]   ;;  %v1373_v14 = vld [vmem:[#allocation8 + $0x30] sm:$0xff]  }
  0x4a   :  { %1156 = vmatpush3.bf16.msra.mxu0 %v1322_v22  ;;  %v1366_v4 = vld [vmem:[#allocation6 + $0x100] sm:$0xff]   ;;  %v1374_v15 = vld [vmem:[#allocation8 + $0x28] sm:$0xff]   ;;  %v1376_v17 = vld [vmem:[#allocation8 + $0x18] sm:$0xff]  }
  0x4b   :  { %1178 = vmatpush3.bf16.msra.mxu1 %v1323_v23  ;;  %1157 = vmatprep.subr.bf16.mxu0 %v1324_v24  ;;  %v1367_v5 = vld [vmem:[#allocation6 + $0x180] sm:$0xff]   ;;  %v1377_v18 = vld [vmem:[#allocation8 + $0x10] sm:$0xff]   ;;  %v1378_v19 = vld [vmem:[#allocation8 + $0x8] sm:$0xff]  }
  0x4c   :  { %1179 = vmatprep.subr.bf16.mxu1 %v1325_v25  ;;  %v1375_v16 = vld [vmem:[#allocation8 + $0x20] sm:$0xff]   ;;  %v1380_v21 = vld [vmem:[#allocation9 + $0x38] sm:$0xff]   ;;  %v1381_v22 = vld [vmem:[#allocation9 + $0x30] sm:$0xff]  }
  0x4d   :  { %v1379_v20 = vld [vmem:[#allocation8] sm:$0xff]   ;;  %v1382_v23 = vld [vmem:[#allocation9 + $0x28] sm:$0xff]   ;;  %v1384_v25 = vld [vmem:[#allocation9 + $0x18] sm:$0xff]  }
  0x4e   :  { %1158 = vmatpush3.bf16.msra.mxu0 %v1326_v26  ;;  %v1383_v24 = vld [vmem:[#allocation9 + $0x20] sm:$0xff]   ;;  %v1385_v26 = vld [vmem:[#allocation9 + $0x10] sm:$0xff]  }
  0x4f   :  { %1180 = vmatpush3.bf16.msra.mxu1 %v1327_v27  ;;  %1159 = vmatprep.subr.bf16.mxu0 %v1328_v28 }
  0x50   :  { %1181 = vmatprep.subr.bf16.mxu1 %v1329_v29 }
  0x52   :  { %1160 = vmatpush3.bf16.msra.mxu0 %v1330_v30 }
  0x53   :  { %1182 = vmatpush3.bf16.msra.mxu1 %v1331_v31  ;;  %1189 = vmatprep.subr.bf16.mxu0 %v1336_v38 }
  0x54   :  { %1211 = vmatprep.subr.bf16.mxu1 %v1337_v39 }
  0x55   :  { %664 = vmatmul.mubr.bf16.vlgmr.msra.gmra.mxu0 %v1054_v34 }
  0x56   :  { %704 = vmatmul.mubr.bf16.vlgmr.msra.gmra.mxu1 %v1056_v36  ;;  %1190 = vmatpush3.bf16.msra.mxu0 %v1338_v40 }
  0x57   :  { %1212 = vmatpush3.bf16.msra.mxu1 %v1339_v41  ;;  %1191 = vmatprep.subr.bf16.mxu0 %v1340_v42 }
  0x58   :  { %1213 = vmatprep.subr.bf16.mxu1 %v1341_v43  ;;  %743 = vmatprep.mubr.bf16.mxu0 %v1059_v8 }
  0x59   :  { %783 = vmatprep.mubr.bf16.mxu1 %v1061_v11 }
  0x5a   :  { %1192 = vmatpush3.bf16.msra.mxu0 %v1342_v44 }
  0x5b   :  { %1214 = vmatpush3.bf16.msra.mxu1 %v1343_v45  ;;  %1193 = vmatprep.subr.bf16.mxu0 %v1344_v46 }
  0x5c   :  { %1215 = vmatprep.subr.bf16.mxu1 %v1345_v47  ;;  %v1126_v47 = vld [vmem:[%s1600_s2] ss:$0 sm:$0xff] }
  0x5e   :  { %1194 = vmatpush3.bf16.msra.mxu0 %v1346_v48 }
  0x5f   :  { %1216 = vmatpush3.bf16.msra.mxu1 %v1347_v49  ;;  %1195 = vmatprep.subr.bf16.mxu0 %v1348_v50 }
  0x60   :  { %1217 = vmatprep.subr.bf16.mxu1 %v1349_v51 }
  0x62   :  { %1196 = vmatpush3.bf16.msra.mxu0 %v1350_v52 }
  0x63   :  { %1218 = vmatpush3.bf16.msra.mxu1 %v1351_v53  ;;  %1197 = vmatprep.subr.bf16.mxu0 %v1352_v54  ;;  %v1386_v53 = vld [vmem:[#allocation9 + $0x8] sm:$0xff]   ;;  %v1387_v54 = vld [vmem:[#allocation9] sm:$0xff]  }
  0x64   :  { %1219 = vmatprep.subr.bf16.mxu1 %v1353_v55  ;;  %v1127_v55 = vld [vmem:[%s1602_s4] ss:$0 sm:$0xff]  ;;  %s1506_s4 = smov [#allocation11]  }
  0x65   :  { %s1043_s24 = sshll.u32 %s1506_s4, 4  ;;  %s1044_s24 = int_to_ptr.vmem [resolvable:$true] %s1043_s24 }
  0x66   :  { %1198 = vmatpush3.bf16.msra.mxu0 %v1354_v56  ;;  %s1470_s25 = scalar_lea.vmem %s1044_s24, 128  ;;  %p1475_p7 = scmp.lt.s32.totalorder %s1044_s24, %s1044_s24 }
  0x67   :  { %1220 = vmatpush3.bf16.msra.mxu1 %v1355_v57  ;;  %1199 = vmatprep.subr.bf16.mxu0 %v1356_v58  ;;  %p1471_p6 = scmp.ne.s32.totalorder %s1044_s24, %s1470_s25  ;;  %p1476_p8 = scmp.lt.s32.totalorder %s1470_s25, %s1470_s25 }
  0x68   :  { %1221 = vmatprep.subr.bf16.mxu1 %v1357_v59 }
  0x69   :  { %p1477_p9 = por %p1476_p8, %p1475_p7 }
  0x6a   :  { %1200 = vmatpush3.bf16.msra.mxu0 %v1358_v60 }
  0x6b   :  { %1222 = vmatpush3.bf16.msra.mxu1 %v1359_v61  ;;  %1201 = vmatprep.subr.bf16.mxu0 %v1360_v62  ;;  %p1478_p10 = pnand %p1477_p9, %p1471_p6 }
  0x6c   :  { %1223 = vmatprep.subr.bf16.mxu1 %v1361_v63  ;;  %v1136_v63 = vld [vmem:[%s1604_s6] ss:$0 sm:$0xff] }
  0x6e   :  { %1202 = vmatpush3.bf16.msra.mxu0 %v1362_v0 }
  0x6f   :  { %1224 = vmatpush3.bf16.msra.mxu1 %v1363_v1  ;;  %1203 = vmatprep.subr.bf16.mxu0 %v1364_v2 }
  0x70   :  { %1225 = vmatprep.subr.bf16.mxu1 %v1365_v3 }
  0x72   :  { %1204 = vmatpush3.bf16.msra.mxu0 %v1366_v4 }
  0x73   :  { %1226 = vmatpush3.bf16.msra.mxu1 %v1367_v5  ;;  %1251 = vmatprep.subr.bf16.mxu0 %v1504_v13 }
  0x74   :  { %1271 = vmatprep.subr.bf16.mxu1 %v1504_v13 }
  0x75   :  { %744 = vmatmul.mubr.bf16.vlgmr.msra.gmra.mxu0 %v1058_v7 }
  0x76   :  { %784 = vmatmul.mubr.bf16.vlgmr.msra.gmra.mxu1 %v1060_v10  ;;  %1252 = vmatpush3.bf16.msra.mxu0 %v1372_v12 }
  0x77   :  { %1253 = vmatprep.subr.bf16.mxu0 %v1504_v13  ;;  %1267 = vmatprep.mubr.msk.bf16.mxu0 %vm1505_vm0, %v1504_v13 }
  0x78   :  { %1287 = vmatprep.mubr.msk.bf16.mxu1 %vm1505_vm0, %v1504_v13  ;;  %1272 = vmatpush3.bf16.msra.mxu1 %v1380_v21 }
  0x79   :  { %1273 = vmatprep.subr.bf16.mxu1 %v1504_v13 }
  0x7a   :  { %1254 = vmatpush3.bf16.msra.mxu0 %v1373_v14 }
  0x7b   :  { %1255 = vmatprep.subr.bf16.mxu0 %v1504_v13 }
  0x7c   :  { %1274 = vmatpush3.bf16.msra.mxu1 %v1381_v22 }
  0x7d   :  { %1275 = vmatprep.subr.bf16.mxu1 %v1504_v13 }
  0x7e   :  { %1256 = vmatpush3.bf16.msra.mxu0 %v1374_v15 }
  0x7f   :  { %1257 = vmatprep.subr.bf16.mxu0 %v1504_v13 }
  0x80   :  { %1276 = vmatpush3.bf16.msra.mxu1 %v1382_v23 }
  0x81   :  { %1277 = vmatprep.subr.bf16.mxu1 %v1504_v13 }
  0x82   :  { %1258 = vmatpush3.bf16.msra.mxu0 %v1375_v16 }
  0x83   :  { %1259 = vmatprep.subr.bf16.mxu0 %v1504_v13 }
  0x84   :  { %1278 = vmatpush3.bf16.msra.mxu1 %v1383_v24 }
  0x85   :  { %1279 = vmatprep.subr.bf16.mxu1 %v1504_v13 }
  0x86   :  { %1260 = vmatpush3.bf16.msra.mxu0 %v1376_v17 }
  0x87   :  { %1261 = vmatprep.subr.bf16.mxu0 %v1504_v13 }
  0x88   :  { %1280 = vmatpush3.bf16.msra.mxu1 %v1384_v25 }
  0x89   :  { %1281 = vmatprep.subr.bf16.mxu1 %v1504_v13 }
  0x8a   :  { %1262 = vmatpush3.bf16.msra.mxu0 %v1377_v18 }
  0x8b   :  { %1263 = vmatprep.subr.bf16.mxu0 %v1504_v13 }
  0x8c   :  { %1282 = vmatpush3.bf16.msra.mxu1 %v1385_v26 }
  0x8d   :  { %1283 = vmatprep.subr.bf16.mxu1 %v1504_v13 }
  0x8e   :  { %1264 = vmatpush3.bf16.msra.mxu0 %v1378_v19 }
  0x8f   :  { %1265 = vmatprep.subr.bf16.mxu0 %v1504_v13 }
  0x90   :  { %1284 = vmatpush3.bf16.msra.mxu1 %v1386_v53 }
  0x91   :  { %1285 = vmatprep.subr.bf16.mxu1 %v1504_v13 }
  0x92   :  { %1266 = vmatpush3.bf16.msra.mxu0 %v1379_v20 }
  0x94   :  { %1286 = vmatpush3.bf16.msra.mxu1 %v1387_v54 }
 0x115   :  { %v1161_v27 = vpop.f32.mrf.mxu0 }
 0x116   :  { %v1183_v28 = vpop.f32.mrf.mxu1 }
 0x117   :  { %v1162_v29 = vpop.f32.mrf.mxu0 }
 0x118   :  { %v1184_v30 = vpop.f32.mrf.mxu1  ;;  %v1163_v35 = vadd.f32 %v1162_v29, %v1161_v27 }
 0x119   :  { %v1164_v31 = vpop.f32.mrf.mxu0  ;;  %v1185_v36 = vadd.f32 %v1184_v30, %v1183_v28 }
 0x11a   :  { %v1186_v32 = vpop.f32.mrf.mxu1 }
 0x11b   :  { %v1165_v33 = vpop.f32.mrf.mxu0  ;;  %v706_v41 = vadd.f32 %v1185_v36, %v1163_v35 }
 0x11c   :  { %v1187_v34 = vpop.f32.mrf.mxu1 }
 0x135   :  { %v1205_v37 = vpop.f32.mrf.mxu0 }
 0x136   :  { %v1227_v38 = vpop.f32.mrf.mxu1 }
 0x137   :  { %v1206_v39 = vpop.f32.mrf.mxu0 }
 0x138   :  { %v1228_v40 = vpop.f32.mrf.mxu1  ;;  %v1207_v42 = vadd.f32 %v1206_v39, %v1205_v37 }
 0x139   :  { %v1208_v43 = vpop.f32.mrf.mxu0  ;;  %v1229_v46 = vadd.f32 %v1228_v40, %v1227_v38 }
 0x13a   :  { %v1230_v44 = vpop.f32.mrf.mxu1  ;;  %v746_v45 = vadd.f32 %v1207_v42, %v706_v41 }
 0x13b   :  { %v1209_v48 = vpop.f32.mrf.mxu0 }
 0x13c   :  { %v1231_v49 = vpop.f32.mrf.mxu1  ;;  %v786_v50 = vadd.f32 %v1229_v46, %v746_v45 }
 0x13e   :  { %v804_v51 = vadd.f32 %v1126_v47, %v786_v50 }
 0x140   :  { %v805_v52 = vpack.c.bf16 %v804_v51, %v804_v51 }
 0x142   :  { %1268 = vmatmul.mubr.bf16.vlgmr.msra.gmra.mxu0 %v805_v52 }
 0x202   :  { %v911_v56 = vpop.f32.mrf.mxu0 }
 0x203   :  { %v912_v57 = vadd.f32 %v1127_v55, %v911_v56 }
 0x204   :  { %v1269_v58 = vpop.f32.mrf.mxu0 }
 0x205   :  { %v917_v59 = vmax.f32 %v912_v57, 0.0 }
 0x206   :  { %v914_v60 = vpop.f32.mrf.mxu0 }
 0x207   :  { %v918_v61 = vpack.c.bf16 %v917_v59, %v917_v59 }
 0x208   :  { %v1270_v62 = vpop.f32.mrf.mxu0 }
 0x209   :  { %1288 = vmatmul.mubr.bf16.vlgmr.msra.gmra.mxu1 %v918_v61 }
 0x2c9   :  { %v1024_v0 = vpop.f32.mrf.mxu1 }
 0x2ca   :  { %v1025_v1 = vadd.f32 %v1136_v63, %v1024_v0 }
 0x2cb   :  { %v1289_v2 = vpop.f32.mrf.mxu1 }
 0x2cc   :  { %v1030_v3 = vmul.f32 %v1025_v1, %v1025_v1 }
 0x2cd   :  { %v1027_v4 = vpop.f32.mrf.mxu1 }
 0x2ce   :  { %1031 = vadd.xlane.f32.xlu0 %v1030_v3 }
 0x2cf   :  { %v1290_v5 = vpop.f32.mrf.mxu1 }
 0x357   :  { %v1032_v6 = vpop.xlane.xlu0 %1031 }
 0x358   :  { %v1033_v7 = vmax.f32 %v1032_v6, 1e-24 }
 0x35a   :  { %1388 = vrsqrt.f32 %v1033_v7 }
 0x367   :  { %v1389_v8 = vpop.eup %1388 }
 0x368   :  { %v1035_v9 = vmul.f32 %v1389_v8, %v1025_v1 }
 0x36a   :  { %1036 = vst [vmem:[#allocation11] sm:$0xff] %v1035_v9 }
 0x36b   :  { %1481 = shalt.err (!%p1478_p10)
}
 0x36c   :  { %1046 = dma.vmem_to_hbm [thread:$0]  %s1044_s24, 128, %s1605_s7, [#allocation5]  }
 0x36d   :  { %1496 = dma.done.wait [#allocation5], 128  }
 0x36e   :  { %1497 = vsyncadd [#allocation5], 4294967168 }
 0x36f   :  { %1050 = vsyncpa [#allocation4], 1 }
 0x370   :  { %1051 = vsyncpa [#allocation7], 1 }
 0x371   :  { %1052 = vsyncpa [#allocation10], 1 }
 0x372   :  { %1053 = vsyncpa [#allocation5], 1 }

</bundles_post_ra>
